<compile_context>
chip_gen: v5e
topology: v5e:2x2
jax: 0.10.0
libtpu: 0.0.40
codegen_flags: <defaults>
</compile_context>

<pallas_src>
import numpy as np
import jax
import jax.numpy as jnp
from jax.experimental import pallas as pl
from jax.experimental.pallas import tpu as pltpu


# ----------------------------- Pallas kernel --------------------------------

def doubleconv_kernel(x_ref, w1_ref, b1_ref, w2_ref, b2_ref, o_ref):
    # x_ref : (N, Cin, S) in VMEM
    # w1_ref: (mid*Cin,)  f32 in SMEM   (BN-folded, row-major [out, in])
    # b1_ref: (mid,)      f32 in SMEM
    # w2_ref: (Cout*mid,) f32 in SMEM
    # b2_ref: (Cout,)     f32 in SMEM
    # o_ref : (N, Cout, S) in VMEM
    N, Cin, S = x_ref.shape
    mid = b1_ref.shape[0]
    Cout = b2_ref.shape[0]

    # Load each input-channel slab once; lane-dense (N, S) vregs.
    xc = [x_ref[:, c, :] for c in range(Cin)]                      # Cin x (N, S)

    # conv1x1 (+ folded BN) -> bias -> ReLU, fully unrolled on the VPU.
    h = []
    for m in range(mid):
        acc = w1_ref[m * Cin] * xc[0]
        for c in range(1, Cin):
            acc = acc + w1_ref[m * Cin + c] * xc[c]
        h.append(jnp.maximum(acc + b1_ref[m], 0.0))                # (N, S)

    # conv1x1 (+ folded BN) -> bias -> ReLU, fully unrolled on the VPU.
    for o in range(Cout):
        acc = w2_ref[o * mid] * h[0]
        for m in range(1, mid):
            acc = acc + w2_ref[o * mid + m] * h[m]
        o_ref[:, o, :] = jnp.maximum(acc + b2_ref[o], 0.0)         # lane-dense store


def down_forward(x_nchw, params):
    """x_nchw: (N, Cin, H, W) float32 (PyTorch layout). Returns (N, Cout, H, W)."""
    N, Cin, H, W = x_nchw.shape
    S = H * W
    w1, b1, w2, b2 = params["w1"], params["b1"], params["w2"], params["b2"]
    Cout = b2.shape[0]

    x_flat = x_nchw.reshape(N, Cin, S)    # free view: NCHW is already channel-major

    out = pl.pallas_call(
        doubleconv_kernel,
        out_shape=jax.ShapeDtypeStruct((N, Cout, S), jnp.float32),
        in_specs=[
            pl.BlockSpec(memory_space=pltpu.MemorySpace.VMEM),     # x
            pl.BlockSpec(memory_space=pltpu.MemorySpace.SMEM),     # w1 (flat)
            pl.BlockSpec(memory_space=pltpu.MemorySpace.SMEM),     # b1
            pl.BlockSpec(memory_space=pltpu.MemorySpace.SMEM),     # w2 (flat)
            pl.BlockSpec(memory_space=pltpu.MemorySpace.SMEM),     # b2
        ],
        out_specs=pl.BlockSpec(memory_space=pltpu.MemorySpace.VMEM),
    )(x_flat, w1, b1, w2, b2)

    return out.reshape(N, Cout, H, W)


# ----------------------------- parameter init -------------------------------

def init_params(in_channels, out_channels, key):
    """Down(in, out) -> DoubleConv(in, out) with mid_channels = out_channels.

    Returns (folded, raw): `folded` has BN scale folded into the conv weights and
    is flattened for SMEM (what the kernel consumes); `raw` keeps the un-folded
    Conv/BN parameters for the pure-JAX reference.
    """
    mid = out_channels
    eps = 1e-5
    ks = jax.random.split(key, 10)

    def bn_params(kg, kb, km, kv, c):
        gamma = jax.random.uniform(kg, (c,), minval=0.5, maxval=1.5)
        beta = 0.1 * jax.random.normal(kb, (c,))
        mean = 0.1 * jax.random.normal(km, (c,))
        var = jax.random.uniform(kv, (c,), minval=0.5, maxval=1.5)
        return gamma, beta, mean, var

    # torch Conv2d weight (out, in, 1, 1) -> stored channel-major (out, in)
    w1 = (0.1 * jax.random.normal(ks[0], (mid, in_channels))).astype(jnp.float32)
    w2 = (0.1 * jax.random.normal(ks[1], (out_channels, mid))).astype(jnp.float32)
    g1, be1, m1, v1 = bn_params(ks[2], ks[3], ks[4], ks[5], mid)
    g2, be2, m2, v2 = bn_params(ks[6], ks[7], ks[8], ks[9], out_channels)

    s1 = g1 / jnp.sqrt(v1 + eps)
    s2 = g2 / jnp.sqrt(v2 + eps)
    folded = {
        "w1": (w1 * s1[:, None]).reshape(-1).astype(jnp.float32),   # (mid*Cin,)
        "b1": (be1 - m1 * s1).astype(jnp.float32),                  # (mid,)
        "w2": (w2 * s2[:, None]).reshape(-1).astype(jnp.float32),   # (Cout*mid,)
        "b2": (be2 - m2 * s2).astype(jnp.float32),                  # (Cout,)
    }
    raw = {"w1": w1, "w2": w2,
           "g1": g1, "be1": be1, "m1": m1, "v1": v1,
           "g2": g2, "be2": be2, "m2": m2, "v2": v2, "eps": eps}
    return folded, raw


# ----------------------------- pure-JAX reference ----------------------------

def down_forward_ref(x_nchw, raw):
    eps = raw["eps"]

    def bn(h, g, b, m, v):
        return ((h - m[None, :, None, None]) /
                jnp.sqrt(v + eps)[None, :, None, None]) * g[None, :, None, None] \
               + b[None, :, None, None]

    h = jnp.einsum("oc,nchw->nohw", raw["w1"], x_nchw)
    h = jnp.maximum(bn(h, raw["g1"], raw["be1"], raw["m1"], raw["v1"]), 0.0)
    y = jnp.einsum("om,nmhw->nohw", raw["w2"], h)
    y = jnp.maximum(bn(y, raw["g2"], raw["be2"], raw["m2"], raw["v2"]), 0.0)
    return y


# ----------------------------- main ------------------------------------------

if __name__ == "__main__":
    # Down(in_channels=4, out_channels=8); x: (N, C, H, W) = (2, 4, 16, 16) NCHW
    N, Cin, H, W = 2, 4, 16, 16
    Cout = 8

    key = jax.random.PRNGKey(0)
    kx, kp = jax.random.split(key)
    x = jax.random.normal(kx, (N, Cin, H, W), dtype=jnp.float32)

    folded, raw = init_params(Cin, Cout, kp)

    out = jax.block_until_ready(down_forward(x, folded))
    ref = jax.block_until_ready(down_forward_ref(x, raw))
    np.testing.assert_allclose(np.asarray(out), np.asarray(ref), rtol=1e-5, atol=1e-5)

    print("KERNEL_OK")
</pallas_src>

<mosaic_0001>
module attributes {stable_mosaic.version = 11 : i64} {
  func.func @doubleconv_kernel(%arg0: memref<2x4x256xf32, #tpu.memory_space<vmem>>, %arg1: memref<32xf32, #tpu.memory_space<smem>>, %arg2: memref<8xf32, #tpu.memory_space<smem>>, %arg3: memref<64xf32, #tpu.memory_space<smem>>, %arg4: memref<8xf32, #tpu.memory_space<smem>>, %arg5: memref<2x8x256xf32, #tpu.memory_space<vmem>>) attributes {dimension_semantics = [], scalar_prefetch = 0 : i64, scratch_operands = 0 : i64, tpu.core_type = #tpu.core_type<tc>} {
    %c0 = arith.constant 0 : index
    %c0_0 = arith.constant 0 : index
    %c0_1 = arith.constant 0 : index
    %0 = vector.load %arg0[%c0, %c0_0, %c0_1] : memref<2x4x256xf32, #tpu.memory_space<vmem>>, vector<2x1x256xf32>
    %1 = vector.shape_cast %0 : vector<2x1x256xf32> to vector<2x256xf32>
    %c0_2 = arith.constant 0 : index
    %c1 = arith.constant 1 : index
    %c0_3 = arith.constant 0 : index
    %2 = vector.load %arg0[%c0_2, %c1, %c0_3] : memref<2x4x256xf32, #tpu.memory_space<vmem>>, vector<2x1x256xf32>
    %3 = vector.shape_cast %2 : vector<2x1x256xf32> to vector<2x256xf32>
    %c0_4 = arith.constant 0 : index
    %c2 = arith.constant 2 : index
    %c0_5 = arith.constant 0 : index
    %4 = vector.load %arg0[%c0_4, %c2, %c0_5] : memref<2x4x256xf32, #tpu.memory_space<vmem>>, vector<2x1x256xf32>
    %5 = vector.shape_cast %4 : vector<2x1x256xf32> to vector<2x256xf32>
    %c0_6 = arith.constant 0 : index
    %c3 = arith.constant 3 : index
    %c0_7 = arith.constant 0 : index
    %6 = vector.load %arg0[%c0_6, %c3, %c0_7] : memref<2x4x256xf32, #tpu.memory_space<vmem>>, vector<2x1x256xf32>
    %7 = vector.shape_cast %6 : vector<2x1x256xf32> to vector<2x256xf32>
    %c0_8 = arith.constant 0 : index
    %8 = memref.load %arg1[%c0_8] : memref<32xf32, #tpu.memory_space<smem>>
    %9 = vector.broadcast %8 : f32 to vector<2x256xf32>
    %10 = arith.mulf %9, %1 : vector<2x256xf32>
    %c1_9 = arith.constant 1 : index
    %11 = memref.load %arg1[%c1_9] : memref<32xf32, #tpu.memory_space<smem>>
    %12 = vector.broadcast %11 : f32 to vector<2x256xf32>
    %13 = arith.mulf %12, %3 : vector<2x256xf32>
    %14 = arith.addf %10, %13 : vector<2x256xf32>
    %c2_10 = arith.constant 2 : index
    %15 = memref.load %arg1[%c2_10] : memref<32xf32, #tpu.memory_space<smem>>
    %16 = vector.broadcast %15 : f32 to vector<2x256xf32>
    %17 = arith.mulf %16, %5 : vector<2x256xf32>
    %18 = arith.addf %14, %17 : vector<2x256xf32>
    %c3_11 = arith.constant 3 : index
    %19 = memref.load %arg1[%c3_11] : memref<32xf32, #tpu.memory_space<smem>>
    %20 = vector.broadcast %19 : f32 to vector<2x256xf32>
    %21 = arith.mulf %20, %7 : vector<2x256xf32>
    %22 = arith.addf %18, %21 : vector<2x256xf32>
    %c0_12 = arith.constant 0 : index
    %23 = memref.load %arg2[%c0_12] : memref<8xf32, #tpu.memory_space<smem>>
    %24 = vector.broadcast %23 : f32 to vector<2x256xf32>
    %25 = arith.addf %22, %24 : vector<2x256xf32>
    %cst = arith.constant 0.000000e+00 : f32
    %26 = vector.broadcast %cst : f32 to vector<2x256xf32>
    %27 = arith.maximumf %25, %26 : vector<2x256xf32>
    %c4 = arith.constant 4 : index
    %28 = memref.load %arg1[%c4] : memref<32xf32, #tpu.memory_space<smem>>
    %29 = vector.broadcast %28 : f32 to vector<2x256xf32>
    %30 = arith.mulf %29, %1 : vector<2x256xf32>
    %c5 = arith.constant 5 : index
    %31 = memref.load %arg1[%c5] : memref<32xf32, #tpu.memory_space<smem>>
    %32 = vector.broadcast %31 : f32 to vector<2x256xf32>
    %33 = arith.mulf %32, %3 : vector<2x256xf32>
    %34 = arith.addf %30, %33 : vector<2x256xf32>
    %c6 = arith.constant 6 : index
    %35 = memref.load %arg1[%c6] : memref<32xf32, #tpu.memory_space<smem>>
    %36 = vector.broadcast %35 : f32 to vector<2x256xf32>
    %37 = arith.mulf %36, %5 : vector<2x256xf32>
    %38 = arith.addf %34, %37 : vector<2x256xf32>
    %c7 = arith.constant 7 : index
    %39 = memref.load %arg1[%c7] : memref<32xf32, #tpu.memory_space<smem>>
    %40 = vector.broadcast %39 : f32 to vector<2x256xf32>
    %41 = arith.mulf %40, %7 : vector<2x256xf32>
    %42 = arith.addf %38, %41 : vector<2x256xf32>
    %c1_13 = arith.constant 1 : index
    %43 = memref.load %arg2[%c1_13] : memref<8xf32, #tpu.memory_space<smem>>
    %44 = vector.broadcast %43 : f32 to vector<2x256xf32>
    %45 = arith.addf %42, %44 : vector<2x256xf32>
    %cst_14 = arith.constant 0.000000e+00 : f32
    %46 = vector.broadcast %cst_14 : f32 to vector<2x256xf32>
    %47 = arith.maximumf %45, %46 : vector<2x256xf32>
    %c8 = arith.constant 8 : index
    %48 = memref.load %arg1[%c8] : memref<32xf32, #tpu.memory_space<smem>>
    %49 = vector.broadcast %48 : f32 to vector<2x256xf32>
    %50 = arith.mulf %49, %1 : vector<2x256xf32>
    %c9 = arith.constant 9 : index
    %51 = memref.load %arg1[%c9] : memref<32xf32, #tpu.memory_space<smem>>
    %52 = vector.broadcast %51 : f32 to vector<2x256xf32>
    %53 = arith.mulf %52, %3 : vector<2x256xf32>
    %54 = arith.addf %50, %53 : vector<2x256xf32>
    %c10 = arith.constant 10 : index
    %55 = memref.load %arg1[%c10] : memref<32xf32, #tpu.memory_space<smem>>
    %56 = vector.broadcast %55 : f32 to vector<2x256xf32>
    %57 = arith.mulf %56, %5 : vector<2x256xf32>
    %58 = arith.addf %54, %57 : vector<2x256xf32>
    %c11 = arith.constant 11 : index
    %59 = memref.load %arg1[%c11] : memref<32xf32, #tpu.memory_space<smem>>
    %60 = vector.broadcast %59 : f32 to vector<2x256xf32>
    %61 = arith.mulf %60, %7 : vector<2x256xf32>
    %62 = arith.addf %58, %61 : vector<2x256xf32>
    %c2_15 = arith.constant 2 : index
    %63 = memref.load %arg2[%c2_15] : memref<8xf32, #tpu.memory_space<smem>>
    %64 = vector.broadcast %63 : f32 to vector<2x256xf32>
    %65 = arith.addf %62, %64 : vector<2x256xf32>
    %cst_16 = arith.constant 0.000000e+00 : f32
    %66 = vector.broadcast %cst_16 : f32 to vector<2x256xf32>
    %67 = arith.maximumf %65, %66 : vector<2x256xf32>
    %c12 = arith.constant 12 : index
    %68 = memref.load %arg1[%c12] : memref<32xf32, #tpu.memory_space<smem>>
    %69 = vector.broadcast %68 : f32 to vector<2x256xf32>
    %70 = arith.mulf %69, %1 : vector<2x256xf32>
    %c13 = arith.constant 13 : index
    %71 = memref.load %arg1[%c13] : memref<32xf32, #tpu.memory_space<smem>>
    %72 = vector.broadcast %71 : f32 to vector<2x256xf32>
    %73 = arith.mulf %72, %3 : vector<2x256xf32>
    %74 = arith.addf %70, %73 : vector<2x256xf32>
    %c14 = arith.constant 14 : index
    %75 = memref.load %arg1[%c14] : memref<32xf32, #tpu.memory_space<smem>>
    %76 = vector.broadcast %75 : f32 to vector<2x256xf32>
    %77 = arith.mulf %76, %5 : vector<2x256xf32>
    %78 = arith.addf %74, %77 : vector<2x256xf32>
    %c15 = arith.constant 15 : index
    %79 = memref.load %arg1[%c15] : memref<32xf32, #tpu.memory_space<smem>>
    %80 = vector.broadcast %79 : f32 to vector<2x256xf32>
    %81 = arith.mulf %80, %7 : vector<2x256xf32>
    %82 = arith.addf %78, %81 : vector<2x256xf32>
    %c3_17 = arith.constant 3 : index
    %83 = memref.load %arg2[%c3_17] : memref<8xf32, #tpu.memory_space<smem>>
    %84 = vector.broadcast %83 : f32 to vector<2x256xf32>
    %85 = arith.addf %82, %84 : vector<2x256xf32>
    %cst_18 = arith.constant 0.000000e+00 : f32
    %86 = vector.broadcast %cst_18 : f32 to vector<2x256xf32>
    %87 = arith.maximumf %85, %86 : vector<2x256xf32>
    %c16 = arith.constant 16 : index
    %88 = memref.load %arg1[%c16] : memref<32xf32, #tpu.memory_space<smem>>
    %89 = vector.broadcast %88 : f32 to vector<2x256xf32>
    %90 = arith.mulf %89, %1 : vector<2x256xf32>
    %c17 = arith.constant 17 : index
    %91 = memref.load %arg1[%c17] : memref<32xf32, #tpu.memory_space<smem>>
    %92 = vector.broadcast %91 : f32 to vector<2x256xf32>
    %93 = arith.mulf %92, %3 : vector<2x256xf32>
    %94 = arith.addf %90, %93 : vector<2x256xf32>
    %c18 = arith.constant 18 : index
    %95 = memref.load %arg1[%c18] : memref<32xf32, #tpu.memory_space<smem>>
    %96 = vector.broadcast %95 : f32 to vector<2x256xf32>
    %97 = arith.mulf %96, %5 : vector<2x256xf32>
    %98 = arith.addf %94, %97 : vector<2x256xf32>
    %c19 = arith.constant 19 : index
    %99 = memref.load %arg1[%c19] : memref<32xf32, #tpu.memory_space<smem>>
    %100 = vector.broadcast %99 : f32 to vector<2x256xf32>
    %101 = arith.mulf %100, %7 : vector<2x256xf32>
    %102 = arith.addf %98, %101 : vector<2x256xf32>
    %c4_19 = arith.constant 4 : index
    %103 = memref.load %arg2[%c4_19] : memref<8xf32, #tpu.memory_space<smem>>
    %104 = vector.broadcast %103 : f32 to vector<2x256xf32>
    %105 = arith.addf %102, %104 : vector<2x256xf32>
    %cst_20 = arith.constant 0.000000e+00 : f32
    %106 = vector.broadcast %cst_20 : f32 to vector<2x256xf32>
    %107 = arith.maximumf %105, %106 : vector<2x256xf32>
    %c20 = arith.constant 20 : index
    %108 = memref.load %arg1[%c20] : memref<32xf32, #tpu.memory_space<smem>>
    %109 = vector.broadcast %108 : f32 to vector<2x256xf32>
    %110 = arith.mulf %109, %1 : vector<2x256xf32>
    %c21 = arith.constant 21 : index
    %111 = memref.load %arg1[%c21] : memref<32xf32, #tpu.memory_space<smem>>
    %112 = vector.broadcast %111 : f32 to vector<2x256xf32>
    %113 = arith.mulf %112, %3 : vector<2x256xf32>
    %114 = arith.addf %110, %113 : vector<2x256xf32>
    %c22 = arith.constant 22 : index
    %115 = memref.load %arg1[%c22] : memref<32xf32, #tpu.memory_space<smem>>
    %116 = vector.broadcast %115 : f32 to vector<2x256xf32>
    %117 = arith.mulf %116, %5 : vector<2x256xf32>
    %118 = arith.addf %114, %117 : vector<2x256xf32>
    %c23 = arith.constant 23 : index
    %119 = memref.load %arg1[%c23] : memref<32xf32, #tpu.memory_space<smem>>
    %120 = vector.broadcast %119 : f32 to vector<2x256xf32>
    %121 = arith.mulf %120, %7 : vector<2x256xf32>
    %122 = arith.addf %118, %121 : vector<2x256xf32>
    %c5_21 = arith.constant 5 : index
    %123 = memref.load %arg2[%c5_21] : memref<8xf32, #tpu.memory_space<smem>>
    %124 = vector.broadcast %123 : f32 to vector<2x256xf32>
    %125 = arith.addf %122, %124 : vector<2x256xf32>
    %cst_22 = arith.constant 0.000000e+00 : f32
    %126 = vector.broadcast %cst_22 : f32 to vector<2x256xf32>
    %127 = arith.maximumf %125, %126 : vector<2x256xf32>
    %c24 = arith.constant 24 : index
    %128 = memref.load %arg1[%c24] : memref<32xf32, #tpu.memory_space<smem>>
    %129 = vector.broadcast %128 : f32 to vector<2x256xf32>
    %130 = arith.mulf %129, %1 : vector<2x256xf32>
    %c25 = arith.constant 25 : index
    %131 = memref.load %arg1[%c25] : memref<32xf32, #tpu.memory_space<smem>>
    %132 = vector.broadcast %131 : f32 to vector<2x256xf32>
    %133 = arith.mulf %132, %3 : vector<2x256xf32>
    %134 = arith.addf %130, %133 : vector<2x256xf32>
    %c26 = arith.constant 26 : index
    %135 = memref.load %arg1[%c26] : memref<32xf32, #tpu.memory_space<smem>>
    %136 = vector.broadcast %135 : f32 to vector<2x256xf32>
    %137 = arith.mulf %136, %5 : vector<2x256xf32>
    %138 = arith.addf %134, %137 : vector<2x256xf32>
    %c27 = arith.constant 27 : index
    %139 = memref.load %arg1[%c27] : memref<32xf32, #tpu.memory_space<smem>>
    %140 = vector.broadcast %139 : f32 to vector<2x256xf32>
    %141 = arith.mulf %140, %7 : vector<2x256xf32>
    %142 = arith.addf %138, %141 : vector<2x256xf32>
    %c6_23 = arith.constant 6 : index
    %143 = memref.load %arg2[%c6_23] : memref<8xf32, #tpu.memory_space<smem>>
    %144 = vector.broadcast %143 : f32 to vector<2x256xf32>
    %145 = arith.addf %142, %144 : vector<2x256xf32>
    %cst_24 = arith.constant 0.000000e+00 : f32
    %146 = vector.broadcast %cst_24 : f32 to vector<2x256xf32>
    %147 = arith.maximumf %145, %146 : vector<2x256xf32>
    %c28 = arith.constant 28 : index
    %148 = memref.load %arg1[%c28] : memref<32xf32, #tpu.memory_space<smem>>
    %149 = vector.broadcast %148 : f32 to vector<2x256xf32>
    %150 = arith.mulf %149, %1 : vector<2x256xf32>
    %c29 = arith.constant 29 : index
    %151 = memref.load %arg1[%c29] : memref<32xf32, #tpu.memory_space<smem>>
    %152 = vector.broadcast %151 : f32 to vector<2x256xf32>
    %153 = arith.mulf %152, %3 : vector<2x256xf32>
    %154 = arith.addf %150, %153 : vector<2x256xf32>
    %c30 = arith.constant 30 : index
    %155 = memref.load %arg1[%c30] : memref<32xf32, #tpu.memory_space<smem>>
    %156 = vector.broadcast %155 : f32 to vector<2x256xf32>
    %157 = arith.mulf %156, %5 : vector<2x256xf32>
    %158 = arith.addf %154, %157 : vector<2x256xf32>
    %c31 = arith.constant 31 : index
    %159 = memref.load %arg1[%c31] : memref<32xf32, #tpu.memory_space<smem>>
    %160 = vector.broadcast %159 : f32 to vector<2x256xf32>
    %161 = arith.mulf %160, %7 : vector<2x256xf32>
    %162 = arith.addf %158, %161 : vector<2x256xf32>
    %c7_25 = arith.constant 7 : index
    %163 = memref.load %arg2[%c7_25] : memref<8xf32, #tpu.memory_space<smem>>
    %164 = vector.broadcast %163 : f32 to vector<2x256xf32>
    %165 = arith.addf %162, %164 : vector<2x256xf32>
    %cst_26 = arith.constant 0.000000e+00 : f32
    %166 = vector.broadcast %cst_26 : f32 to vector<2x256xf32>
    %167 = arith.maximumf %165, %166 : vector<2x256xf32>
    %c0_27 = arith.constant 0 : index
    %168 = memref.load %arg3[%c0_27] : memref<64xf32, #tpu.memory_space<smem>>
    %169 = vector.broadcast %168 : f32 to vector<2x256xf32>
    %170 = arith.mulf %169, %27 : vector<2x256xf32>
    %c1_28 = arith.constant 1 : index
    %171 = memref.load %arg3[%c1_28] : memref<64xf32, #tpu.memory_space<smem>>
    %172 = vector.broadcast %171 : f32 to vector<2x256xf32>
    %173 = arith.mulf %172, %47 : vector<2x256xf32>
    %174 = arith.addf %170, %173 : vector<2x256xf32>
    %c2_29 = arith.constant 2 : index
    %175 = memref.load %arg3[%c2_29] : memref<64xf32, #tpu.memory_space<smem>>
    %176 = vector.broadcast %175 : f32 to vector<2x256xf32>
    %177 = arith.mulf %176, %67 : vector<2x256xf32>
    %178 = arith.addf %174, %177 : vector<2x256xf32>
    %c3_30 = arith.constant 3 : index
    %179 = memref.load %arg3[%c3_30] : memref<64xf32, #tpu.memory_space<smem>>
    %180 = vector.broadcast %179 : f32 to vector<2x256xf32>
    %181 = arith.mulf %180, %87 : vector<2x256xf32>
    %182 = arith.addf %178, %181 : vector<2x256xf32>
    %c4_31 = arith.constant 4 : index
    %183 = memref.load %arg3[%c4_31] : memref<64xf32, #tpu.memory_space<smem>>
    %184 = vector.broadcast %183 : f32 to vector<2x256xf32>
    %185 = arith.mulf %184, %107 : vector<2x256xf32>
    %186 = arith.addf %182, %185 : vector<2x256xf32>
    %c5_32 = arith.constant 5 : index
    %187 = memref.load %arg3[%c5_32] : memref<64xf32, #tpu.memory_space<smem>>
    %188 = vector.broadcast %187 : f32 to vector<2x256xf32>
    %189 = arith.mulf %188, %127 : vector<2x256xf32>
    %190 = arith.addf %186, %189 : vector<2x256xf32>
    %c6_33 = arith.constant 6 : index
    %191 = memref.load %arg3[%c6_33] : memref<64xf32, #tpu.memory_space<smem>>
    %192 = vector.broadcast %191 : f32 to vector<2x256xf32>
    %193 = arith.mulf %192, %147 : vector<2x256xf32>
    %194 = arith.addf %190, %193 : vector<2x256xf32>
    %c7_34 = arith.constant 7 : index
    %195 = memref.load %arg3[%c7_34] : memref<64xf32, #tpu.memory_space<smem>>
    %196 = vector.broadcast %195 : f32 to vector<2x256xf32>
    %197 = arith.mulf %196, %167 : vector<2x256xf32>
    %198 = arith.addf %194, %197 : vector<2x256xf32>
    %c0_35 = arith.constant 0 : index
    %199 = memref.load %arg4[%c0_35] : memref<8xf32, #tpu.memory_space<smem>>
    %200 = vector.broadcast %199 : f32 to vector<2x256xf32>
    %201 = arith.addf %198, %200 : vector<2x256xf32>
    %cst_36 = arith.constant 0.000000e+00 : f32
    %202 = vector.broadcast %cst_36 : f32 to vector<2x256xf32>
    %203 = arith.maximumf %201, %202 : vector<2x256xf32>
    %c0_37 = arith.constant 0 : index
    %c0_38 = arith.constant 0 : index
    %c0_39 = arith.constant 0 : index
    %204 = vector.load %arg5[%c0_37, %c0_38, %c0_39] : memref<2x8x256xf32, #tpu.memory_space<vmem>>, vector<2x1x256xf32>
    %205 = vector.shape_cast %204 : vector<2x1x256xf32> to vector<2x256xf32>
    %206 = vector.shape_cast %203 : vector<2x256xf32> to vector<2x1x256xf32>
    tpu.vector_store %arg5[%c0_37, %c0_38, %c0_39], %206 {strides = array<i32>} : memref<2x8x256xf32, #tpu.memory_space<vmem>>, vector<2x1x256xf32>,
    %c8_40 = arith.constant 8 : index
    %207 = memref.load %arg3[%c8_40] : memref<64xf32, #tpu.memory_space<smem>>
    %208 = vector.broadcast %207 : f32 to vector<2x256xf32>
    %209 = arith.mulf %208, %27 : vector<2x256xf32>
    %c9_41 = arith.constant 9 : index
    %210 = memref.load %arg3[%c9_41] : memref<64xf32, #tpu.memory_space<smem>>
    %211 = vector.broadcast %210 : f32 to vector<2x256xf32>
    %212 = arith.mulf %211, %47 : vector<2x256xf32>
    %213 = arith.addf %209, %212 : vector<2x256xf32>
    %c10_42 = arith.constant 10 : index
    %214 = memref.load %arg3[%c10_42] : memref<64xf32, #tpu.memory_space<smem>>
    %215 = vector.broadcast %214 : f32 to vector<2x256xf32>
    %216 = arith.mulf %215, %67 : vector<2x256xf32>
    %217 = arith.addf %213, %216 : vector<2x256xf32>
    %c11_43 = arith.constant 11 : index
    %218 = memref.load %arg3[%c11_43] : memref<64xf32, #tpu.memory_space<smem>>
    %219 = vector.broadcast %218 : f32 to vector<2x256xf32>
    %220 = arith.mulf %219, %87 : vector<2x256xf32>
    %221 = arith.addf %217, %220 : vector<2x256xf32>
    %c12_44 = arith.constant 12 : index
    %222 = memref.load %arg3[%c12_44] : memref<64xf32, #tpu.memory_space<smem>>
    %223 = vector.broadcast %222 : f32 to vector<2x256xf32>
    %224 = arith.mulf %223, %107 : vector<2x256xf32>
    %225 = arith.addf %221, %224 : vector<2x256xf32>
    %c13_45 = arith.constant 13 : index
    %226 = memref.load %arg3[%c13_45] : memref<64xf32, #tpu.memory_space<smem>>
    %227 = vector.broadcast %226 : f32 to vector<2x256xf32>
    %228 = arith.mulf %227, %127 : vector<2x256xf32>
    %229 = arith.addf %225, %228 : vector<2x256xf32>
    %c14_46 = arith.constant 14 : index
    %230 = memref.load %arg3[%c14_46] : memref<64xf32, #tpu.memory_space<smem>>
    %231 = vector.broadcast %230 : f32 to vector<2x256xf32>
    %232 = arith.mulf %231, %147 : vector<2x256xf32>
    %233 = arith.addf %229, %232 : vector<2x256xf32>
    %c15_47 = arith.constant 15 : index
    %234 = memref.load %arg3[%c15_47] : memref<64xf32, #tpu.memory_space<smem>>
    %235 = vector.broadcast %234 : f32 to vector<2x256xf32>
    %236 = arith.mulf %235, %167 : vector<2x256xf32>
    %237 = arith.addf %233, %236 : vector<2x256xf32>
    %c1_48 = arith.constant 1 : index
    %238 = memref.load %arg4[%c1_48] : memref<8xf32, #tpu.memory_space<smem>>
    %239 = vector.broadcast %238 : f32 to vector<2x256xf32>
    %240 = arith.addf %237, %239 : vector<2x256xf32>
    %cst_49 = arith.constant 0.000000e+00 : f32
    %241 = vector.broadcast %cst_49 : f32 to vector<2x256xf32>
    %242 = arith.maximumf %240, %241 : vector<2x256xf32>
    %c0_50 = arith.constant 0 : index
    %c1_51 = arith.constant 1 : index
    %c0_52 = arith.constant 0 : index
    %243 = vector.load %arg5[%c0_50, %c1_51, %c0_52] : memref<2x8x256xf32, #tpu.memory_space<vmem>>, vector<2x1x256xf32>
    %244 = vector.shape_cast %243 : vector<2x1x256xf32> to vector<2x256xf32>
    %245 = vector.shape_cast %242 : vector<2x256xf32> to vector<2x1x256xf32>
    tpu.vector_store %arg5[%c0_50, %c1_51, %c0_52], %245 {strides = array<i32>} : memref<2x8x256xf32, #tpu.memory_space<vmem>>, vector<2x1x256xf32>,
    %c16_53 = arith.constant 16 : index
    %246 = memref.load %arg3[%c16_53] : memref<64xf32, #tpu.memory_space<smem>>
    %247 = vector.broadcast %246 : f32 to vector<2x256xf32>
    %248 = arith.mulf %247, %27 : vector<2x256xf32>
    %c17_54 = arith.constant 17 : index
    %249 = memref.load %arg3[%c17_54] : memref<64xf32, #tpu.memory_space<smem>>
    %250 = vector.broadcast %249 : f32 to vector<2x256xf32>
    %251 = arith.mulf %250, %47 : vector<2x256xf32>
    %252 = arith.addf %248, %251 : vector<2x256xf32>
    %c18_55 = arith.constant 18 : index
    %253 = memref.load %arg3[%c18_55] : memref<64xf32, #tpu.memory_space<smem>>
    %254 = vector.broadcast %253 : f32 to vector<2x256xf32>
    %255 = arith.mulf %254, %67 : vector<2x256xf32>
    %256 = arith.addf %252, %255 : vector<2x256xf32>
    %c19_56 = arith.constant 19 : index
    %257 = memref.load %arg3[%c19_56] : memref<64xf32, #tpu.memory_space<smem>>
    %258 = vector.broadcast %257 : f32 to vector<2x256xf32>
    %259 = arith.mulf %258, %87 : vector<2x256xf32>
    %260 = arith.addf %256, %259 : vector<2x256xf32>
    %c20_57 = arith.constant 20 : index
    %261 = memref.load %arg3[%c20_57] : memref<64xf32, #tpu.memory_space<smem>>
    %262 = vector.broadcast %261 : f32 to vector<2x256xf32>
    %263 = arith.mulf %262, %107 : vector<2x256xf32>
    %264 = arith.addf %260, %263 : vector<2x256xf32>
    %c21_58 = arith.constant 21 : index
    %265 = memref.load %arg3[%c21_58] : memref<64xf32, #tpu.memory_space<smem>>
    %266 = vector.broadcast %265 : f32 to vector<2x256xf32>
    %267 = arith.mulf %266, %127 : vector<2x256xf32>
    %268 = arith.addf %264, %267 : vector<2x256xf32>
    %c22_59 = arith.constant 22 : index
    %269 = memref.load %arg3[%c22_59] : memref<64xf32, #tpu.memory_space<smem>>
    %270 = vector.broadcast %269 : f32 to vector<2x256xf32>
    %271 = arith.mulf %270, %147 : vector<2x256xf32>
    %272 = arith.addf %268, %271 : vector<2x256xf32>
    %c23_60 = arith.constant 23 : index
    %273 = memref.load %arg3[%c23_60] : memref<64xf32, #tpu.memory_space<smem>>
    %274 = vector.broadcast %273 : f32 to vector<2x256xf32>
    %275 = arith.mulf %274, %167 : vector<2x256xf32>
    %276 = arith.addf %272, %275 : vector<2x256xf32>
    %c2_61 = arith.constant 2 : index
    %277 = memref.load %arg4[%c2_61] : memref<8xf32, #tpu.memory_space<smem>>
    %278 = vector.broadcast %277 : f32 to vector<2x256xf32>
    %279 = arith.addf %276, %278 : vector<2x256xf32>
    %cst_62 = arith.constant 0.000000e+00 : f32
    %280 = vector.broadcast %cst_62 : f32 to vector<2x256xf32>
    %281 = arith.maximumf %279, %280 : vector<2x256xf32>
    %c0_63 = arith.constant 0 : index
    %c2_64 = arith.constant 2 : index
    %c0_65 = arith.constant 0 : index
    %282 = vector.load %arg5[%c0_63, %c2_64, %c0_65] : memref<2x8x256xf32, #tpu.memory_space<vmem>>, vector<2x1x256xf32>
    %283 = vector.shape_cast %282 : vector<2x1x256xf32> to vector<2x256xf32>
    %284 = vector.shape_cast %281 : vector<2x256xf32> to vector<2x1x256xf32>
    tpu.vector_store %arg5[%c0_63, %c2_64, %c0_65], %284 {strides = array<i32>} : memref<2x8x256xf32, #tpu.memory_space<vmem>>, vector<2x1x256xf32>,
    %c24_66 = arith.constant 24 : index
    %285 = memref.load %arg3[%c24_66] : memref<64xf32, #tpu.memory_space<smem>>
    %286 = vector.broadcast %285 : f32 to vector<2x256xf32>
    %287 = arith.mulf %286, %27 : vector<2x256xf32>
    %c25_67 = arith.constant 25 : index
    %288 = memref.load %arg3[%c25_67] : memref<64xf32, #tpu.memory_space<smem>>
    %289 = vector.broadcast %288 : f32 to vector<2x256xf32>
    %290 = arith.mulf %289, %47 : vector<2x256xf32>
    %291 = arith.addf %287, %290 : vector<2x256xf32>
    %c26_68 = arith.constant 26 : index
    %292 = memref.load %arg3[%c26_68] : memref<64xf32, #tpu.memory_space<smem>>
    %293 = vector.broadcast %292 : f32 to vector<2x256xf32>
    %294 = arith.mulf %293, %67 : vector<2x256xf32>
    %295 = arith.addf %291, %294 : vector<2x256xf32>
    %c27_69 = arith.constant 27 : index
    %296 = memref.load %arg3[%c27_69] : memref<64xf32, #tpu.memory_space<smem>>
    %297 = vector.broadcast %296 : f32 to vector<2x256xf32>
    %298 = arith.mulf %297, %87 : vector<2x256xf32>
    %299 = arith.addf %295, %298 : vector<2x256xf32>
    %c28_70 = arith.constant 28 : index
    %300 = memref.load %arg3[%c28_70] : memref<64xf32, #tpu.memory_space<smem>>
    %301 = vector.broadcast %300 : f32 to vector<2x256xf32>
    %302 = arith.mulf %301, %107 : vector<2x256xf32>
    %303 = arith.addf %299, %302 : vector<2x256xf32>
    %c29_71 = arith.constant 29 : index
    %304 = memref.load %arg3[%c29_71] : memref<64xf32, #tpu.memory_space<smem>>
    %305 = vector.broadcast %304 : f32 to vector<2x256xf32>
    %306 = arith.mulf %305, %127 : vector<2x256xf32>
    %307 = arith.addf %303, %306 : vector<2x256xf32>
    %c30_72 = arith.constant 30 : index
    %308 = memref.load %arg3[%c30_72] : memref<64xf32, #tpu.memory_space<smem>>
    %309 = vector.broadcast %308 : f32 to vector<2x256xf32>
    %310 = arith.mulf %309, %147 : vector<2x256xf32>
    %311 = arith.addf %307, %310 : vector<2x256xf32>
    %c31_73 = arith.constant 31 : index
    %312 = memref.load %arg3[%c31_73] : memref<64xf32, #tpu.memory_space<smem>>
    %313 = vector.broadcast %312 : f32 to vector<2x256xf32>
    %314 = arith.mulf %313, %167 : vector<2x256xf32>
    %315 = arith.addf %311, %314 : vector<2x256xf32>
    %c3_74 = arith.constant 3 : index
    %316 = memref.load %arg4[%c3_74] : memref<8xf32, #tpu.memory_space<smem>>
    %317 = vector.broadcast %316 : f32 to vector<2x256xf32>
    %318 = arith.addf %315, %317 : vector<2x256xf32>
    %cst_75 = arith.constant 0.000000e+00 : f32
    %319 = vector.broadcast %cst_75 : f32 to vector<2x256xf32>
    %320 = arith.maximumf %318, %319 : vector<2x256xf32>
    %c0_76 = arith.constant 0 : index
    %c3_77 = arith.constant 3 : index
    %c0_78 = arith.constant 0 : index
    %321 = vector.load %arg5[%c0_76, %c3_77, %c0_78] : memref<2x8x256xf32, #tpu.memory_space<vmem>>, vector<2x1x256xf32>
    %322 = vector.shape_cast %321 : vector<2x1x256xf32> to vector<2x256xf32>
    %323 = vector.shape_cast %320 : vector<2x256xf32> to vector<2x1x256xf32>
    tpu.vector_store %arg5[%c0_76, %c3_77, %c0_78], %323 {strides = array<i32>} : memref<2x8x256xf32, #tpu.memory_space<vmem>>, vector<2x1x256xf32>,
    %c32 = arith.constant 32 : index
    %324 = memref.load %arg3[%c32] : memref<64xf32, #tpu.memory_space<smem>>
    %325 = vector.broadcast %324 : f32 to vector<2x256xf32>
    %326 = arith.mulf %325, %27 : vector<2x256xf32>
    %c33 = arith.constant 33 : index
    %327 = memref.load %arg3[%c33] : memref<64xf32, #tpu.memory_space<smem>>
    %328 = vector.broadcast %327 : f32 to vector<2x256xf32>
    %329 = arith.mulf %328, %47 : vector<2x256xf32>
    %330 = arith.addf %326, %329 : vector<2x256xf32>
    %c34 = arith.constant 34 : index
    %331 = memref.load %arg3[%c34] : memref<64xf32, #tpu.memory_space<smem>>
    %332 = vector.broadcast %331 : f32 to vector<2x256xf32>
    %333 = arith.mulf %332, %67 : vector<2x256xf32>
    %334 = arith.addf %330, %333 : vector<2x256xf32>
    %c35 = arith.constant 35 : index
    %335 = memref.load %arg3[%c35] : memref<64xf32, #tpu.memory_space<smem>>
    %336 = vector.broadcast %335 : f32 to vector<2x256xf32>
    %337 = arith.mulf %336, %87 : vector<2x256xf32>
    %338 = arith.addf %334, %337 : vector<2x256xf32>
    %c36 = arith.constant 36 : index
    %339 = memref.load %arg3[%c36] : memref<64xf32, #tpu.memory_space<smem>>
    %340 = vector.broadcast %339 : f32 to vector<2x256xf32>
    %341 = arith.mulf %340, %107 : vector<2x256xf32>
    %342 = arith.addf %338, %341 : vector<2x256xf32>
    %c37 = arith.constant 37 : index
    %343 = memref.load %arg3[%c37] : memref<64xf32, #tpu.memory_space<smem>>
    %344 = vector.broadcast %343 : f32 to vector<2x256xf32>
    %345 = arith.mulf %344, %127 : vector<2x256xf32>
    %346 = arith.addf %342, %345 : vector<2x256xf32>
    %c38 = arith.constant 38 : index
    %347 = memref.load %arg3[%c38] : memref<64xf32, #tpu.memory_space<smem>>
    %348 = vector.broadcast %347 : f32 to vector<2x256xf32>
    %349 = arith.mulf %348, %147 : vector<2x256xf32>
    %350 = arith.addf %346, %349 : vector<2x256xf32>
    %c39 = arith.constant 39 : index
    %351 = memref.load %arg3[%c39] : memref<64xf32, #tpu.memory_space<smem>>
    %352 = vector.broadcast %351 : f32 to vector<2x256xf32>
    %353 = arith.mulf %352, %167 : vector<2x256xf32>
    %354 = arith.addf %350, %353 : vector<2x256xf32>
    %c4_79 = arith.constant 4 : index
    %355 = memref.load %arg4[%c4_79] : memref<8xf32, #tpu.memory_space<smem>>
    %356 = vector.broadcast %355 : f32 to vector<2x256xf32>
    %357 = arith.addf %354, %356 : vector<2x256xf32>
    %cst_80 = arith.constant 0.000000e+00 : f32
    %358 = vector.broadcast %cst_80 : f32 to vector<2x256xf32>
    %359 = arith.maximumf %357, %358 : vector<2x256xf32>
    %c0_81 = arith.constant 0 : index
    %c4_82 = arith.constant 4 : index
    %c0_83 = arith.constant 0 : index
    %360 = vector.load %arg5[%c0_81, %c4_82, %c0_83] : memref<2x8x256xf32, #tpu.memory_space<vmem>>, vector<2x1x256xf32>
    %361 = vector.shape_cast %360 : vector<2x1x256xf32> to vector<2x256xf32>
    %362 = vector.shape_cast %359 : vector<2x256xf32> to vector<2x1x256xf32>
    tpu.vector_store %arg5[%c0_81, %c4_82, %c0_83], %362 {strides = array<i32>} : memref<2x8x256xf32, #tpu.memory_space<vmem>>, vector<2x1x256xf32>,
    %c40 = arith.constant 40 : index
    %363 = memref.load %arg3[%c40] : memref<64xf32, #tpu.memory_space<smem>>
    %364 = vector.broadcast %363 : f32 to vector<2x256xf32>
    %365 = arith.mulf %364, %27 : vector<2x256xf32>
    %c41 = arith.constant 41 : index
    %366 = memref.load %arg3[%c41] : memref<64xf32, #tpu.memory_space<smem>>
    %367 = vector.broadcast %366 : f32 to vector<2x256xf32>
    %368 = arith.mulf %367, %47 : vector<2x256xf32>
    %369 = arith.addf %365, %368 : vector<2x256xf32>
    %c42 = arith.constant 42 : index
    %370 = memref.load %arg3[%c42] : memref<64xf32, #tpu.memory_space<smem>>
    %371 = vector.broadcast %370 : f32 to vector<2x256xf32>
    %372 = arith.mulf %371, %67 : vector<2x256xf32>
    %373 = arith.addf %369, %372 : vector<2x256xf32>
    %c43 = arith.constant 43 : index
    %374 = memref.load %arg3[%c43] : memref<64xf32, #tpu.memory_space<smem>>
    %375 = vector.broadcast %374 : f32 to vector<2x256xf32>
    %376 = arith.mulf %375, %87 : vector<2x256xf32>
    %377 = arith.addf %373, %376 : vector<2x256xf32>
    %c44 = arith.constant 44 : index
    %378 = memref.load %arg3[%c44] : memref<64xf32, #tpu.memory_space<smem>>
    %379 = vector.broadcast %378 : f32 to vector<2x256xf32>
    %380 = arith.mulf %379, %107 : vector<2x256xf32>
    %381 = arith.addf %377, %380 : vector<2x256xf32>
    %c45 = arith.constant 45 : index
    %382 = memref.load %arg3[%c45] : memref<64xf32, #tpu.memory_space<smem>>
    %383 = vector.broadcast %382 : f32 to vector<2x256xf32>
    %384 = arith.mulf %383, %127 : vector<2x256xf32>
    %385 = arith.addf %381, %384 : vector<2x256xf32>
    %c46 = arith.constant 46 : index
    %386 = memref.load %arg3[%c46] : memref<64xf32, #tpu.memory_space<smem>>
    %387 = vector.broadcast %386 : f32 to vector<2x256xf32>
    %388 = arith.mulf %387, %147 : vector<2x256xf32>
    %389 = arith.addf %385, %388 : vector<2x256xf32>
    %c47 = arith.constant 47 : index
    %390 = memref.load %arg3[%c47] : memref<64xf32, #tpu.memory_space<smem>>
    %391 = vector.broadcast %390 : f32 to vector<2x256xf32>
    %392 = arith.mulf %391, %167 : vector<2x256xf32>
    %393 = arith.addf %389, %392 : vector<2x256xf32>
    %c5_84 = arith.constant 5 : index
    %394 = memref.load %arg4[%c5_84] : memref<8xf32, #tpu.memory_space<smem>>
    %395 = vector.broadcast %394 : f32 to vector<2x256xf32>
    %396 = arith.addf %393, %395 : vector<2x256xf32>
    %cst_85 = arith.constant 0.000000e+00 : f32
    %397 = vector.broadcast %cst_85 : f32 to vector<2x256xf32>
    %398 = arith.maximumf %396, %397 : vector<2x256xf32>
    %c0_86 = arith.constant 0 : index
    %c5_87 = arith.constant 5 : index
    %c0_88 = arith.constant 0 : index
    %399 = vector.load %arg5[%c0_86, %c5_87, %c0_88] : memref<2x8x256xf32, #tpu.memory_space<vmem>>, vector<2x1x256xf32>
    %400 = vector.shape_cast %399 : vector<2x1x256xf32> to vector<2x256xf32>
    %401 = vector.shape_cast %398 : vector<2x256xf32> to vector<2x1x256xf32>
    tpu.vector_store %arg5[%c0_86, %c5_87, %c0_88], %401 {strides = array<i32>} : memref<2x8x256xf32, #tpu.memory_space<vmem>>, vector<2x1x256xf32>,
    %c48 = arith.constant 48 : index
    %402 = memref.load %arg3[%c48] : memref<64xf32, #tpu.memory_space<smem>>
    %403 = vector.broadcast %402 : f32 to vector<2x256xf32>
    %404 = arith.mulf %403, %27 : vector<2x256xf32>
    %c49 = arith.constant 49 : index
    %405 = memref.load %arg3[%c49] : memref<64xf32, #tpu.memory_space<smem>>
    %406 = vector.broadcast %405 : f32 to vector<2x256xf32>
    %407 = arith.mulf %406, %47 : vector<2x256xf32>
    %408 = arith.addf %404, %407 : vector<2x256xf32>
    %c50 = arith.constant 50 : index
    %409 = memref.load %arg3[%c50] : memref<64xf32, #tpu.memory_space<smem>>
    %410 = vector.broadcast %409 : f32 to vector<2x256xf32>
    %411 = arith.mulf %410, %67 : vector<2x256xf32>
    %412 = arith.addf %408, %411 : vector<2x256xf32>
    %c51 = arith.constant 51 : index
    %413 = memref.load %arg3[%c51] : memref<64xf32, #tpu.memory_space<smem>>
    %414 = vector.broadcast %413 : f32 to vector<2x256xf32>
    %415 = arith.mulf %414, %87 : vector<2x256xf32>
    %416 = arith.addf %412, %415 : vector<2x256xf32>
    %c52 = arith.constant 52 : index
    %417 = memref.load %arg3[%c52] : memref<64xf32, #tpu.memory_space<smem>>
    %418 = vector.broadcast %417 : f32 to vector<2x256xf32>
    %419 = arith.mulf %418, %107 : vector<2x256xf32>
    %420 = arith.addf %416, %419 : vector<2x256xf32>
    %c53 = arith.constant 53 : index
    %421 = memref.load %arg3[%c53] : memref<64xf32, #tpu.memory_space<smem>>
    %422 = vector.broadcast %421 : f32 to vector<2x256xf32>
    %423 = arith.mulf %422, %127 : vector<2x256xf32>
    %424 = arith.addf %420, %423 : vector<2x256xf32>
    %c54 = arith.constant 54 : index
    %425 = memref.load %arg3[%c54] : memref<64xf32, #tpu.memory_space<smem>>
    %426 = vector.broadcast %425 : f32 to vector<2x256xf32>
    %427 = arith.mulf %426, %147 : vector<2x256xf32>
    %428 = arith.addf %424, %427 : vector<2x256xf32>
    %c55 = arith.constant 55 : index
    %429 = memref.load %arg3[%c55] : memref<64xf32, #tpu.memory_space<smem>>
    %430 = vector.broadcast %429 : f32 to vector<2x256xf32>
    %431 = arith.mulf %430, %167 : vector<2x256xf32>
    %432 = arith.addf %428, %431 : vector<2x256xf32>
    %c6_89 = arith.constant 6 : index
    %433 = memref.load %arg4[%c6_89] : memref<8xf32, #tpu.memory_space<smem>>
    %434 = vector.broadcast %433 : f32 to vector<2x256xf32>
    %435 = arith.addf %432, %434 : vector<2x256xf32>
    %cst_90 = arith.constant 0.000000e+00 : f32
    %436 = vector.broadcast %cst_90 : f32 to vector<2x256xf32>
    %437 = arith.maximumf %435, %436 : vector<2x256xf32>
    %c0_91 = arith.constant 0 : index
    %c6_92 = arith.constant 6 : index
    %c0_93 = arith.constant 0 : index
    %438 = vector.load %arg5[%c0_91, %c6_92, %c0_93] : memref<2x8x256xf32, #tpu.memory_space<vmem>>, vector<2x1x256xf32>
    %439 = vector.shape_cast %438 : vector<2x1x256xf32> to vector<2x256xf32>
    %440 = vector.shape_cast %437 : vector<2x256xf32> to vector<2x1x256xf32>
    tpu.vector_store %arg5[%c0_91, %c6_92, %c0_93], %440 {strides = array<i32>} : memref<2x8x256xf32, #tpu.memory_space<vmem>>, vector<2x1x256xf32>,
    %c56 = arith.constant 56 : index
    %441 = memref.load %arg3[%c56] : memref<64xf32, #tpu.memory_space<smem>>
    %442 = vector.broadcast %441 : f32 to vector<2x256xf32>
    %443 = arith.mulf %442, %27 : vector<2x256xf32>
    %c57 = arith.constant 57 : index
    %444 = memref.load %arg3[%c57] : memref<64xf32, #tpu.memory_space<smem>>
    %445 = vector.broadcast %444 : f32 to vector<2x256xf32>
    %446 = arith.mulf %445, %47 : vector<2x256xf32>
    %447 = arith.addf %443, %446 : vector<2x256xf32>
    %c58 = arith.constant 58 : index
    %448 = memref.load %arg3[%c58] : memref<64xf32, #tpu.memory_space<smem>>
    %449 = vector.broadcast %448 : f32 to vector<2x256xf32>
    %450 = arith.mulf %449, %67 : vector<2x256xf32>
    %451 = arith.addf %447, %450 : vector<2x256xf32>
    %c59 = arith.constant 59 : index
    %452 = memref.load %arg3[%c59] : memref<64xf32, #tpu.memory_space<smem>>
    %453 = vector.broadcast %452 : f32 to vector<2x256xf32>
    %454 = arith.mulf %453, %87 : vector<2x256xf32>
    %455 = arith.addf %451, %454 : vector<2x256xf32>
    %c60 = arith.constant 60 : index
    %456 = memref.load %arg3[%c60] : memref<64xf32, #tpu.memory_space<smem>>
    %457 = vector.broadcast %456 : f32 to vector<2x256xf32>
    %458 = arith.mulf %457, %107 : vector<2x256xf32>
    %459 = arith.addf %455, %458 : vector<2x256xf32>
    %c61 = arith.constant 61 : index
    %460 = memref.load %arg3[%c61] : memref<64xf32, #tpu.memory_space<smem>>
    %461 = vector.broadcast %460 : f32 to vector<2x256xf32>
    %462 = arith.mulf %461, %127 : vector<2x256xf32>
    %463 = arith.addf %459, %462 : vector<2x256xf32>
    %c62 = arith.constant 62 : index
    %464 = memref.load %arg3[%c62] : memref<64xf32, #tpu.memory_space<smem>>
    %465 = vector.broadcast %464 : f32 to vector<2x256xf32>
    %466 = arith.mulf %465, %147 : vector<2x256xf32>
    %467 = arith.addf %463, %466 : vector<2x256xf32>
    %c63 = arith.constant 63 : index
    %468 = memref.load %arg3[%c63] : memref<64xf32, #tpu.memory_space<smem>>
    %469 = vector.broadcast %468 : f32 to vector<2x256xf32>
    %470 = arith.mulf %469, %167 : vector<2x256xf32>
    %471 = arith.addf %467, %470 : vector<2x256xf32>
    %c7_94 = arith.constant 7 : index
    %472 = memref.load %arg4[%c7_94] : memref<8xf32, #tpu.memory_space<smem>>
    %473 = vector.broadcast %472 : f32 to vector<2x256xf32>
    %474 = arith.addf %471, %473 : vector<2x256xf32>
    %cst_95 = arith.constant 0.000000e+00 : f32
    %475 = vector.broadcast %cst_95 : f32 to vector<2x256xf32>
    %476 = arith.maximumf %474, %475 : vector<2x256xf32>
    %c0_96 = arith.constant 0 : index
    %c7_97 = arith.constant 7 : index
    %c0_98 = arith.constant 0 : index
    %477 = vector.load %arg5[%c0_96, %c7_97, %c0_98] : memref<2x8x256xf32, #tpu.memory_space<vmem>>, vector<2x1x256xf32>
    %478 = vector.shape_cast %477 : vector<2x1x256xf32> to vector<2x256xf32>
    %479 = vector.shape_cast %476 : vector<2x256xf32> to vector<2x1x256xf32>
    tpu.vector_store %arg5[%c0_96, %c7_97, %c0_98], %479 {strides = array<i32>} : memref<2x8x256xf32, #tpu.memory_space<vmem>>, vector<2x1x256xf32>,
    return
  }
}

</mosaic_0001>

<bundles_post_ra>
// kernel: tpu_custom_call.1
= control target key start
LH: loop header
LB: loop body
LE: loop exit
PB: predicated region body
PF: predicated region fallthrough
CT: control target
= control target key end

     0   :  { %10 = vsyncpa [#allocation3], 0  ;;  %s1796_s0 = inlined_call_operand.hbm [shape: f32[2,4,256], index: 0, kind: input, shape index: {}]   ;;  %s1797_s1 = inlined_call_operand.hbm [shape: f32[32], index: 1, kind: input, shape index: {}]   ;;  %s1798_s2 = inlined_call_operand.vmem [shape: f32[8], index: 2, kind: input, shape index: {}]   ;;  %s1799_s3 = inlined_call_operand.vmem [shape: f32[64], index: 3, kind: input, shape index: {}]   ;;  %s1800_s4 = inlined_call_operand.vmem [shape: f32[8], index: 4, kind: input, shape index: {}]   ;;  %s1801_s5 = inlined_call_operand.hbm [shape: f32[2,8,256], index: 5, kind: output, shape index: {}]  }
   0x1   :  { %11 = vsyncpa [#allocation5], 0 }
   0x2   :  { %12 = vsyncpa [#allocation6], 0 }
   0x3   :  { %13 = vsyncpa [#allocation10], 0  ;;  %s51_s20 = sshll.u32 %s1799_s3, 4  ;;  %s52_s20 = int_to_ptr.vmem [resolvable:$true] %s51_s20 }
   0x4   :  { %14 = vsyncpa [#allocation4], 0  ;;  %s19_s23 = sshll.u32 %s1796_s0, 4  ;;  %s1037_s24 = smov [#allocation9]   ;;  %s20_s23 = int_to_ptr.hbm [resolvable:$true] %s19_s23 }
   0x5   :  { %54 = dma.vmem_to_smem %s52_s20, 16, %s1037_s24, [#allocation10]  }
   0x6   :  { %s1038_s25 = smov [#allocation2]   ;;  %s1039_s27 = smov 128  }
   0x7   :  { %s21_s26 = sshll.u32 %s1038_s25, 4  ;;  %s1040_s28 = smov 8   ;;  %s22_s26 = int_to_ptr.vmem [resolvable:$true] %s21_s26 }
   0x8   :  { %27 = dma.hbm_to_vmem [thread:$0]  %s20_s23, 256, %s22_s26, [#allocation3], %s1039_s27, %s1039_s27, %s1040_s28  }
   0x9   :  { %s33_s6 = sshll.u32 %s1797_s1, 4  ;;  %s42_s8 = sshll.u32 %s1798_s2, 4  ;;  %s34_s6 = int_to_ptr.hbm [resolvable:$true] %s33_s6  ;;  %s43_s8 = int_to_ptr.vmem [resolvable:$true] %s42_s8 }
   0xa   :  { %s1041_s9 = smov [#allocation7]   ;;  %s1042_s0 = smov [#allocation8]  }
   0xb   :  { %36 = dma.hbm_to_smem %s34_s6, 16, %s1041_s9, [#allocation5]  }
   0xc   :  { %45 = dma.vmem_to_smem %s43_s8, 16, %s1042_s0, [#allocation6]  }
   0xd   :  { %s60_s12 = sshll.u32 %s1800_s4, 4  ;;  %s1043_s13 = smov [#allocation11]   ;;  %s61_s12 = int_to_ptr.vmem [resolvable:$true] %s60_s12 }
   0xe   :  { %63 = dma.vmem_to_smem %s61_s12, 16, %s1043_s13, [#allocation10]  }
   0xf   :  { %1027 = dma.done.wait [#allocation3], 256  }
  0x10   :  { %1028 = vsyncadd [#allocation3], 4294967040 }
  0x11   :  { %1029 = dma.done.wait [#allocation5], 16  }
  0x12   :  { %1030 = vsyncadd [#allocation5], 4294967280 }
  0x13   :  { %1031 = dma.done.wait [#allocation6], 16  }
  0x14   :  { %1032 = vsyncadd [#allocation6], 4294967280 }
  0x15   :  { %1033 = dma.done.wait [#allocation10], 32  }
  0x16   :  { %1034 = vsyncadd [#allocation10], 4294967264 }
  0x17   :  { %84 = sfence }
  0x18   :  { %s100_s1 = sld [smem:[#allocation7]]  ;;  %v1092_v0 = vld [vmem:[#allocation2] ss:$4 sm:$0x3] }
  0x19   :  { %s813_s2 = sld [smem:[#allocation7 + $0x1]]  ;;  %v1094_v1 = vld [vmem:[#allocation2 + $0x1] ss:$4 sm:$0x3] }
  0x1a   :  { %s814_s14 = sld [smem:[#allocation7 + $0x2]]  ;;  %v1096_v2 = vld [vmem:[#allocation2 + $0x2] ss:$4 sm:$0x3] }
  0x1b   :  { %s815_s4 = sld [smem:[#allocation7 + $0x3]]  ;;  %v1100_v3 = vld [vmem:[#allocation2 + $0x8] ss:$4 sm:$0x3] }
  0x1c   :  { %s1098_s15 = sld [smem:[#allocation8]]  ;;  %v1104_v4 = vld [vmem:[#allocation2 + $0x9] ss:$4 sm:$0x3] }
  0x1d   :  { %s1102_s16 = sld [smem:[#allocation7 + $0x4]]  ;;  %v1108_v6 = vld [vmem:[#allocation2 + $0xa] ss:$4 sm:$0x3] }
  0x1e   :  { %v101_v5 = vstv %s100_s1  ;;  %s1106_s17 = sld [smem:[#allocation7 + $0x5]]  ;;  %v1110_v7 = vld [vmem:[#allocation2 + $0x3] ss:$4 sm:$0x3] }
  0x1f   :  { %v102_v8 = vmul.f32 %v101_v5, %v1092_v0  ;;  %v105_v9 = vstv %s813_s2  ;;  %s1113_s18 = sld [smem:[#allocation7 + $0x6]]  ;;  %v103_v10 = vmul.f32 %v101_v5, %v1100_v3  ;;  %v1119_v13 = vld [vmem:[#allocation2 + $0xb] ss:$4 sm:$0x3] }
  0x20   :  { %v106_v11 = vmul.f32 %v105_v9, %v1094_v1  ;;  %v111_v12 = vstv %s814_s14  ;;  %s1117_s19 = sld [smem:[#allocation7 + $0x7]]  ;;  %v107_v14 = vmul.f32 %v105_v9, %v1104_v4 }
  0x21   :  { %v112_v15 = vmul.f32 %v111_v12, %v1096_v2  ;;  %v117_v16 = vstv %s815_s4  ;;  %s1123_s20 = sld [smem:[#allocation8 + $0x1]]  ;;  %v113_v17 = vmul.f32 %v111_v12, %v1108_v6 }
  0x22   :  { %v108_v18 = vadd.f32 %v106_v11, %v102_v8  ;;  %v118_v19 = vmul.f32 %v117_v16, %v1110_v7  ;;  %s1127_s21 = sld [smem:[#allocation7 + $0x8]]  ;;  %v109_v20 = vadd.f32 %v107_v14, %v103_v10  ;;  %v123_v21 = vstv %s1098_s15 }
  0x23   :  { %v129_v22 = vstv %s1102_s16  ;;  %s1131_s22 = sld [smem:[#allocation7 + $0x9]]  ;;  %v119_v23 = vmul.f32 %v117_v16, %v1119_v13 }
  0x24   :  { %v114_v24 = vadd.f32 %v112_v15, %v108_v18  ;;  %v130_v25 = vmul.f32 %v129_v22, %v1092_v0  ;;  %v133_v26 = vstv %s1106_s17  ;;  %s1136_s23 = sld [smem:[#allocation7 + $0xa]]  ;;  %v115_v27 = vadd.f32 %v113_v17, %v109_v20 }
  0x25   :  { %v134_v28 = vmul.f32 %v133_v26, %v1094_v1  ;;  %v139_v29 = vstv %s1113_s18  ;;  %s1140_s24 = sld [smem:[#allocation7 + $0xb]]  ;;  %v131_v30 = vmul.f32 %v129_v22, %v1100_v3  ;;  %v135_v31 = vmul.f32 %v133_v26, %v1104_v4 }
  0x26   :  { %v120_v32 = vadd.f32 %v118_v19, %v114_v24  ;;  %v140_v33 = vmul.f32 %v139_v29, %v1096_v2  ;;  %v145_v34 = vstv %s1117_s19  ;;  %s1146_s25 = sld [smem:[#allocation8 + $0x2]]  ;;  %v121_v35 = vadd.f32 %v119_v23, %v115_v27 }
  0x27   :  { %v136_v36 = vadd.f32 %v134_v28, %v130_v25  ;;  %v146_v37 = vmul.f32 %v145_v34, %v1110_v7  ;;  %s1149_s26 = sld [smem:[#allocation7 + $0xc]]  ;;  %v137_v38 = vadd.f32 %v135_v31, %v131_v30  ;;  %v141_v42 = vmul.f32 %v139_v29, %v1108_v6 }
  0x28   :  { %v124_v39 = vadd.f32 %v123_v21, %v120_v32  ;;  %v157_v40 = vstv %s1127_s21  ;;  %s1152_s27 = sld [smem:[#allocation7 + $0xd]]  ;;  %v125_v41 = vadd.f32 %v123_v21, %v121_v35  ;;  %v147_v46 = vmul.f32 %v145_v34, %v1119_v13 }
  0x29   :  { %v142_v43 = vadd.f32 %v140_v33, %v136_v36  ;;  %v158_v44 = vmul.f32 %v157_v40, %v1092_v0  ;;  %v161_v45 = vstv %s1131_s22  ;;  %s1157_s28 = sld [smem:[#allocation7 + $0xe]]  ;;  %v151_v48 = vstv %s1123_s20 }
  0x2a   :  { %v1160_v47 = vmax.f32 %v124_v39, 0.0  ;;  %v162_v49 = vmul.f32 %v161_v45, %v1094_v1  ;;  %v167_v50 = vstv %s1136_s23  ;;  %s1165_s29 = sld [smem:[#allocation7 + $0xf]]  ;;  %v143_v54 = vadd.f32 %v141_v42, %v137_v38 }
  0x2b   :  { %v148_v51 = vadd.f32 %v146_v37, %v142_v43  ;;  %v168_v52 = vmul.f32 %v167_v50, %v1096_v2  ;;  %v173_v53 = vstv %s1140_s24  ;;  %s1169_s30 = sld [smem:[#allocation8 + $0x3]]  ;;  %v1174_v57 = vmax.f32 %v125_v41, 0.0 }
  0x2c   :  { %v164_v55 = vadd.f32 %v162_v49, %v158_v44  ;;  %v174_v56 = vmul.f32 %v173_v53, %v1110_v7  ;;  %s1172_s6 = sld [smem:[#allocation7 + $0x10]]  ;;  %v159_v58 = vmul.f32 %v157_v40, %v1100_v3  ;;  %v149_v61 = vadd.f32 %v147_v46, %v143_v54 }
  0x2d   :  { %v152_v59 = vadd.f32 %v151_v48, %v148_v51  ;;  %v185_v60 = vstv %s1149_s26  ;;  %s1178_s3 = sld [smem:[#allocation7 + $0x11]]  ;;  %v163_v62 = vmul.f32 %v161_v45, %v1104_v4  ;;  %v169_v9 = vmul.f32 %v167_v50, %v1108_v6 }
  0x2e   :  { %v170_v63 = vadd.f32 %v168_v52, %v164_v55  ;;  %v186_v5 = vmul.f32 %v185_v60, %v1092_v0  ;;  %v189_v8 = vstv %s1152_s27  ;;  %s1183_s7 = sld [smem:[#allocation7 + $0x12]]  ;;  %v179_v10 = vstv %s1146_s25 }
  0x2f   :  { %v190_v11 = vmul.f32 %v189_v8, %v1094_v1  ;;  %v195_v12 = vstv %s1157_s28  ;;  %s1189_s8 = sld [smem:[#allocation7 + $0x13]]  ;;  %v153_v14 = vadd.f32 %v151_v48, %v149_v61  ;;  %v165_v18 = vadd.f32 %v163_v62, %v159_v58 }
  0x30   :  { %v176_v15 = vadd.f32 %v174_v56, %v170_v63  ;;  %v196_v16 = vmul.f32 %v195_v12, %v1096_v2  ;;  %v201_v17 = vstv %s1165_s29  ;;  %s1193_s9 = sld [smem:[#allocation8 + $0x4]]  ;;  %v1195_v19 = vmax.f32 %v152_v59, 0.0 }
  0x31   :  { %v192_v20 = vadd.f32 %v190_v11, %v186_v5  ;;  %v202_v21 = vmul.f32 %v201_v17, %v1110_v7  ;;  %v207_v22 = vstv %s1169_s30  ;;  %s1199_s0 = sld [smem:[#allocation7 + $0x14]]  ;;  %v171_v25 = vadd.f32 %v169_v9, %v165_v18 }
  0x32   :  { %v180_v23 = vadd.f32 %v179_v10, %v176_v15  ;;  %v213_v24 = vstv %s1172_s6  ;;  %s1202_s10 = sld [smem:[#allocation7 + $0x15]]  ;;  %v175_v26 = vmul.f32 %v173_v53, %v1119_v13  ;;  %v187_v30 = vmul.f32 %v185_v60, %v1100_v3 }
  0x33   :  { %v198_v27 = vadd.f32 %v196_v16, %v192_v20  ;;  %v214_v28 = vmul.f32 %v213_v24, %v1092_v0  ;;  %v217_v29 = vstv %s1178_s3  ;;  %s1207_s11 = sld [smem:[#allocation7 + $0x16]]  ;;  %v1214_v33 = vmax.f32 %v153_v14, 0.0 }
  0x34   :  { %v218_v31 = vmul.f32 %v217_v29, %v1094_v1  ;;  %v223_v32 = vstv %s1183_s7  ;;  %s1212_s12 = sld [smem:[#allocation7 + $0x17]]  ;;  %v177_v34 = vadd.f32 %v175_v26, %v171_v25  ;;  %v191_v38 = vmul.f32 %v189_v8, %v1104_v4 }
  0x35   :  { %v204_v35 = vadd.f32 %v202_v21, %v198_v27  ;;  %v224_v36 = vmul.f32 %v223_v32, %v1096_v2  ;;  %v229_v37 = vstv %s1189_s8  ;;  %s1220_s13 = sld [smem:[#allocation8 + $0x5]]  ;;  %v1223_v39 = vmax.f32 %v180_v23, 0.0 }
  0x36   :  { %v220_v40 = vadd.f32 %v218_v31, %v214_v28  ;;  %v230_v41 = vmul.f32 %v229_v37, %v1110_v7  ;;  %s1226_s1 = sld [smem:[#allocation7 + $0x18]]  ;;  %v181_v42 = vadd.f32 %v179_v10, %v177_v34  ;;  %v193_v45 = vadd.f32 %v191_v38, %v187_v30 }
  0x37   :  { %v208_v43 = vadd.f32 %v207_v22, %v204_v35  ;;  %v241_v44 = vstv %s1199_s0  ;;  %s1231_s2 = sld [smem:[#allocation7 + $0x19]]  ;;  %v197_v46 = vmul.f32 %v195_v12, %v1108_v6  ;;  %v235_v49 = vstv %s1193_s9 }
  0x38   :  { %v226_v48 = vadd.f32 %v224_v36, %v220_v40  ;;  %v242_v50 = vmul.f32 %v241_v44, %v1092_v0  ;;  %v245_v51 = vstv %s1202_s10  ;;  %s1239_s14 = sld [smem:[#allocation7 + $0x1a]]  ;;  %v1249_v55 = vmax.f32 %v181_v42, 0.0 }
  0x39   :  { %v1241_v52 = vmax.f32 %v208_v43, 0.0  ;;  %v246_v53 = vmul.f32 %v245_v51, %v1094_v1  ;;  %v251_v54 = vstv %s1207_s11  ;;  %s1247_s4 = sld [smem:[#allocation7 + $0x1b]]  ;;  %v199_v60 = vadd.f32 %v197_v46, %v193_v45 }
  0x3a   :  { %v232_v56 = vadd.f32 %v230_v41, %v226_v48  ;;  %v252_v58 = vmul.f32 %v251_v54, %v1096_v2  ;;  %v257_v59 = vstv %s1212_s12  ;;  %s1255_s15 = sld [smem:[#allocation8 + $0x6]]  ;;  %v376_v5 = vlaneseq }
  0x3b   :  { %v248_v61 = vadd.f32 %v246_v53, %v242_v50  ;;  %v258_v62 = vmul.f32 %v257_v59, %v1110_v7  ;;  %v263_v63 = vstv %s1220_s13  ;;  %s1261_s16 = sld [smem:[#allocation7 + $0x1c]]  ;;  %v203_v10 = vmul.f32 %v201_v17, %v1119_v13 }
  0x3c   :  { %v236_v8 = vadd.f32 %v235_v49, %v232_v56  ;;  %v269_v9 = vstv %s1226_s1  ;;  %s1266_s17 = sld [smem:[#allocation7 + $0x1d]]  ;;  %v215_v11 = vmul.f32 %v213_v24, %v1100_v3  ;;  %v219_v16 = vmul.f32 %v217_v29, %v1104_v4 }
  0x3d   :  { %v254_v12 = vadd.f32 %v252_v58, %v248_v61  ;;  %v270_v14 = vmul.f32 %v269_v9, %v1092_v0  ;;  %v273_v15 = vstv %s1231_s2  ;;  %s1274_s18 = sld [smem:[#allocation7 + $0x1e]]  ;;  %v205_v21 = vadd.f32 %v203_v10, %v199_v60 }
  0x3e   :  { %v1277_v18 = vmax.f32 %v236_v8, 0.0  ;;  %v274_v17 = vmul.f32 %v273_v15, %v1094_v1  ;;  %v279_v20 = vstv %s1239_s14  ;;  %s1283_s19 = sld [smem:[#allocation7 + $0x1f]]  ;;  %v221_v26 = vadd.f32 %v219_v16, %v215_v11 }
  0x3f   :  { %v260_v23 = vadd.f32 %v258_v62, %v254_v12  ;;  %v280_v24 = vmul.f32 %v279_v20, %v1096_v2  ;;  %v285_v25 = vstv %s1247_s4  ;;  %s1289_s20 = sld [smem:[#allocation8 + $0x7]]  ;;  %v209_v30 = vadd.f32 %v207_v22, %v205_v21 }
  0x40   :  { %v276_v27 = vadd.f32 %v274_v17, %v270_v14  ;;  %v286_v28 = vmul.f32 %v285_v25, %v1110_v7  ;;  %v291_v29 = vstv %s1255_s15  ;;  %s1295_s21 = sld [smem:[#allocation9]]  ;;  %v225_v35 = vmul.f32 %v223_v32, %v1108_v6 }
  0x41   :  { %v264_v31 = vadd.f32 %v263_v63, %v260_v23  ;;  %v297_v34 = vstv %s1261_s16  ;;  %s1302_s22 = sld [smem:[#allocation9 + $0x1]]  ;;  %v231_v36 = vmul.f32 %v229_v37, %v1119_v13  ;;  %v1314_v22 = vmax.f32 %v209_v30, 0.0 }
  0x42   :  { %v282_v38 = vadd.f32 %v280_v24, %v276_v27  ;;  %v298_v40 = vmul.f32 %v297_v34, %v1092_v0  ;;  %v301_v41 = vstv %s1266_s17  ;;  %s1312_s23 = sld [smem:[#allocation9 + $0x2]]  ;;  %v227_v37 = vadd.f32 %v225_v35, %v221_v26 }
  0x43   :  { %v1316_v42 = vmax.f32 %v264_v31, 0.0  ;;  %v302_v32 = vmul.f32 %v301_v41, %v1094_v1  ;;  %v307_v43 = vstv %s1274_s18  ;;  %s1322_s24 = sld [smem:[#allocation9 + $0x3]]  ;;  %v243_v48 = vmul.f32 %v241_v44, %v1100_v3 }
  0x44   :  { %v288_v0 = vadd.f32 %v286_v28, %v282_v38  ;;  %v308_v45 = vmul.f32 %v307_v43, %v1096_v2  ;;  %v313_v46 = vstv %s1283_s19  ;;  %s1328_s25 = sld [smem:[#allocation9 + $0x4]]  ;;  %v233_v56 = vadd.f32 %v231_v36, %v227_v37 }
  0x45   :  { %v304_v50 = vadd.f32 %v302_v32, %v298_v40  ;;  %v314_v1 = vmul.f32 %v313_v46, %v1110_v7  ;;  %v319_v53 = vstv %s1289_s20  ;;  %s1335_s26 = sld [smem:[#allocation9 + $0x5]]  ;;  %v247_v2 = vmul.f32 %v245_v51, %v1104_v4 }
  0x46   :  { %v292_v58 = vadd.f32 %v291_v29, %v288_v0  ;;  %v325_v60 = vstv %s1295_s21  ;;  %s1340_s27 = sld [smem:[#allocation9 + $0x6]]  ;;  %v253_v44 = vmul.f32 %v251_v54, %v1108_v6  ;;  %v237_v8 = vadd.f32 %v235_v49, %v233_v56 }
  0x47   :  { %v310_v61 = vadd.f32 %v308_v45, %v304_v50  ;;  %v326_v7 = vmul.f32 %v325_v60, %v1160_v47  ;;  %v329_v62 = vstv %s1302_s22  ;;  %s1350_s28 = sld [smem:[#allocation9 + $0x7]]  ;;  %v249_v54 = vadd.f32 %v247_v2, %v243_v48 }
  0x48   :  { %v1354_v10 = vmax.f32 %v292_v58, 0.0  ;;  %v330_v11 = vmul.f32 %v329_v62, %v1195_v19  ;;  %v335_v51 = vstv %s1312_s23  ;;  %s1358_s29 = sld [smem:[#allocation11]]  ;;  %v1362_v17 = vmax.f32 %v237_v8, 0.0 }
  0x49   :  { %v316_v12 = vadd.f32 %v314_v1, %v310_v61  ;;  %v336_v14 = vmul.f32 %v335_v51, %v1223_v39  ;;  %v341_v16 = vstv %s1322_s24  ;;  %v255_v24 = vadd.f32 %v253_v44, %v249_v54  ;;  %s1373_s30 = sld [smem:[#allocation9 + $0x8]] }
  0x4a   :  { %v332_v49 = vadd.f32 %v330_v11, %v326_v7  ;;  %v342_v21 = vmul.f32 %v341_v16, %v1241_v52  ;;  %v347_v23 = vstv %s1328_s25  ;;  %v259_v30 = vmul.f32 %v257_v59, %v1119_v13  ;;  %s1380_s6 = sld [smem:[#allocation9 + $0x9]] }
  0x4b   :  { %v320_v26 = vadd.f32 %v319_v53, %v316_v12  ;;  %v348_v27 = vmul.f32 %v347_v23, %v1277_v18  ;;  %v353_v28 = vstv %s1335_s26  ;;  %v271_v38 = vmul.f32 %v269_v9, %v1100_v3  ;;  %s1388_s3 = sld [smem:[#allocation9 + $0xa]] }
  0x4c   :  { %v338_v31 = vadd.f32 %v336_v14, %v332_v49  ;;  %v354_v35 = vmul.f32 %v353_v28, %v1316_v42  ;;  %v359_v36 = vstv %s1340_s27  ;;  %v261_v37 = vadd.f32 %v259_v30, %v255_v24  ;;  %s1397_s7 = sld [smem:[#allocation9 + $0xb]] }
  0x4d   :  { %v1382_v40 = vmax.f32 %v320_v26, 0.0  ;;  %v360_v59 = vmul.f32 %v359_v36, %v1354_v10  ;;  %v365_v32 = vstv %s1350_s28  ;;  %v275_v48 = vmul.f32 %v273_v15, %v1104_v4  ;;  %s1410_s8 = sld [smem:[#allocation9 + $0xc]] }
  0x4e   :  { %v344_v0 = vadd.f32 %v342_v21, %v338_v31  ;;  %v371_v45 = vstv %s1358_s29  ;;  %v281_v9 = vmul.f32 %v279_v20, %v1108_v6  ;;  %v265_v1 = vadd.f32 %v263_v63, %v261_v37  ;;  %s1428_s9 = sld [smem:[#allocation9 + $0xd]] }
  0x4f   :  { %v366_v50 = vmul.f32 %v365_v32, %v1382_v40  ;;  %v287_v56 = vmul.f32 %v285_v25, %v1119_v13  ;;  %v299_v58 = vmul.f32 %v297_v34, %v1100_v3  ;;  %v277_v15 = vadd.f32 %v275_v48, %v271_v38  ;;  %s1431_s0 = sld [smem:[#allocation9 + $0xe]] }
  0x50   :  { %v350_v2 = vadd.f32 %v348_v27, %v344_v0  ;;  %v303_v20 = vmul.f32 %v301_v41, %v1104_v4  ;;  %v309_v44 = vmul.f32 %v307_v43, %v1108_v6  ;;  %vm1419_vm0 = vcmp.lt.s32.totalorder %v376_v5, 256  ;;  %s1436_s10 = sld [smem:[#allocation9 + $0xf]] }
  0x51   :  { %v1423_v63 = vmax.f32 %v265_v1, 0.0  ;;  %v315_v25 = vmul.f32 %v313_v46, %v1119_v13  ;;  %v327_v3 = vmul.f32 %v325_v60, %v1174_v57  ;;  %v331_v34 = vmul.f32 %v329_v62, %v1214_v33  ;;  %s1442_s11 = sld [smem:[#allocation11 + $0x1]] }
  0x52   :  { %v356_v4 = vadd.f32 %v354_v35, %v350_v2  ;;  %v283_v41 = vadd.f32 %v281_v9, %v277_v15  ;;  %v305_v6 = vadd.f32 %v303_v20, %v299_v58  ;;  %v337_v5 = vmul.f32 %v335_v51, %v1249_v55  ;;  %s1447_s12 = sld [smem:[#allocation9 + $0x10]] }
  0x53   :  { %v333_v43 = vadd.f32 %v331_v34, %v327_v3  ;;  %v343_v13 = vmul.f32 %v341_v16, %v1314_v22  ;;  %v349_v46 = vmul.f32 %v347_v23, %v1362_v17  ;;  %v355_v60 = vmul.f32 %v353_v28, %v1423_v63  ;;  %s1452_s13 = sld [smem:[#allocation9 + $0x11]] }
  0x54   :  { %v362_v7 = vadd.f32 %v360_v59, %v356_v4  ;;  %v289_v62 = vadd.f32 %v287_v56, %v283_v41  ;;  %v311_v8 = vadd.f32 %v309_v44, %v305_v6  ;;  %v386_v11 = vstv %s1373_s30  ;;  %s1460_s1 = sld [smem:[#allocation9 + $0x12]] }
  0x55   :  { %v339_v51 = vadd.f32 %v337_v5, %v333_v43  ;;  %v387_v54 = vmul.f32 %v386_v11, %v1160_v47  ;;  %v390_v12 = vstv %s1380_s6  ;;  %v396_v14 = vstv %s1388_s3  ;;  %s1465_s2 = sld [smem:[#allocation9 + $0x13]] }
  0x56   :  { %v368_v16 = vadd.f32 %v366_v50, %v362_v7  ;;  %v293_v49 = vadd.f32 %v291_v29, %v289_v62  ;;  %v317_v21 = vadd.f32 %v315_v25, %v311_v8  ;;  %v391_v23 = vmul.f32 %v390_v12, %v1195_v19  ;;  %s1472_s14 = sld [smem:[#allocation9 + $0x14]] }
  0x57   :  { %v345_v24 = vadd.f32 %v343_v13, %v339_v51  ;;  %v397_v26 = vmul.f32 %v396_v14, %v1223_v39  ;;  %v402_v27 = vstv %s1397_s7  ;;  %v408_v28 = vstv %s1410_s8  ;;  %s1482_s4 = sld [smem:[#allocation9 + $0x15]] }
  0x58   :  { %v372_v30 = vadd.f32 %v371_v45, %v368_v16  ;;  %v1456_v31 = vmax.f32 %v293_v49, 0.0  ;;  %v321_v29 = vadd.f32 %v319_v53, %v317_v21  ;;  %v393_v35 = vadd.f32 %v391_v23, %v387_v54  ;;  %s1487_s15 = sld [smem:[#allocation9 + $0x16]] }
  0x59   :  { %v351_v38 = vadd.f32 %v349_v46, %v345_v24  ;;  %v403_v59 = vmul.f32 %v402_v27, %v1241_v52  ;;  %v409_v37 = vmul.f32 %v408_v28, %v1277_v18  ;;  %v414_v0 = vstv %s1428_s9  ;;  %s1492_s16 = sld [smem:[#allocation9 + $0x17]] }
  0x5a   :  { %v374_v48 = vmax.f32 %v372_v30, 0.0  ;;  %v1467_v9 = vmax.f32 %v321_v29, 0.0  ;;  %v361_v50 = vmul.f32 %v359_v36, %v1456_v31  ;;  %v399_v1 = vadd.f32 %v397_v26, %v393_v35  ;;  %s1499_s17 = sld [smem:[#allocation11 + $0x2]] }
  0x5b   :  { %v357_v53 = vadd.f32 %v355_v60, %v351_v38  ;;  %v420_v56 = vstv %s1431_s0  ;;  %v426_v58 = vstv %s1436_s10  ;;  %v415_v20 = vmul.f32 %v414_v0, %v1316_v42  ;;  %s1505_s18 = sld [smem:[#allocation9 + $0x18]] }
  0x5c   :  { %380 = vst.msk [vmem:[#allocation12] ss:$8 sm:$0x3] %vm1419_vm0, %v374_v48  ;;  %v367_v2 = vmul.f32 %v365_v32, %v1467_v9  ;;  %v405_v15 = vadd.f32 %v403_v59, %v399_v1  ;;  %v421_v36 = vmul.f32 %v420_v56, %v1354_v10  ;;  %v388_v25 = vmul.f32 %v386_v11, %v1174_v57  ;;  %s1510_s19 = sld [smem:[#allocation9 + $0x19]] }
  0x5d   :  { %v363_v44 = vadd.f32 %v361_v50, %v357_v53  ;;  %v392_v3 = vmul.f32 %v390_v12, %v1214_v33  ;;  %v427_v32 = vmul.f32 %v426_v58, %v1382_v40  ;;  %v432_v4 = vstv %s1442_s11  ;;  %s1513_s20 = sld [smem:[#allocation9 + $0x1a]] }
  0x5e   :  { %v411_v34 = vadd.f32 %v409_v37, %v405_v15  ;;  %v398_v41 = vmul.f32 %v396_v14, %v1249_v55  ;;  %v404_v43 = vmul.f32 %v402_v27, %v1314_v22  ;;  %v410_v13 = vmul.f32 %v408_v28, %v1362_v17  ;;  %s1518_s21 = sld [smem:[#allocation9 + $0x1b]] }
  0x5f   :  { %v369_v6 = vadd.f32 %v367_v2, %v363_v44  ;;  %v394_v5 = vadd.f32 %v392_v3, %v388_v25  ;;  %v416_v60 = vmul.f32 %v414_v0, %v1423_v63  ;;  %v444_v7 = vstv %s1447_s12  ;;  %s1524_s22 = sld [smem:[#allocation9 + $0x1c]] }
  0x60   :  { %v417_v46 = vadd.f32 %v415_v20, %v411_v34  ;;  %v448_v62 = vstv %s1452_s13  ;;  %v445_v51 = vmul.f32 %v444_v7, %v1160_v47  ;;  %v454_v14 = vstv %s1460_s1  ;;  %s1531_s23 = sld [smem:[#allocation9 + $0x1d]] }
  0x61   :  { %v373_v8 = vadd.f32 %v371_v45, %v369_v6  ;;  %v400_v11 = vadd.f32 %v398_v41, %v394_v5  ;;  %v449_v54 = vmul.f32 %v448_v62, %v1195_v19  ;;  %v460_v16 = vstv %s1465_s2  ;;  %s1535_s24 = sld [smem:[#allocation9 + $0x1e]] }
  0x62   :  { %v423_v12 = vadd.f32 %v421_v36, %v417_v46  ;;  %v466_v49 = vstv %s1472_s14  ;;  %v455_v45 = vmul.f32 %v454_v14, %v1223_v39  ;;  %v422_v27 = vmul.f32 %v420_v56, %v1456_v31  ;;  %s1540_s25 = sld [smem:[#allocation9 + $0x1f]] }
  0x63   :  { %v375_v21 = vmax.f32 %v373_v8, 0.0  ;;  %v406_v23 = vadd.f32 %v404_v43, %v400_v11  ;;  %v451_v24 = vadd.f32 %v449_v54, %v445_v51  ;;  %v461_v28 = vmul.f32 %v460_v16, %v1241_v52  ;;  %s1549_s26 = sld [smem:[#allocation11 + $0x3]] }
  0x64   :  { %v429_v26 = vadd.f32 %v427_v32, %v423_v12  ;;  %v472_v30 = vstv %s1482_s4  ;;  %v467_v38 = vmul.f32 %v466_v49, %v1277_v18  ;;  %v478_v59 = vstv %s1487_s15  ;;  %s1553_s27 = sld [smem:[#allocation9 + $0x20]] }
  0x65   :  { %383 = vst.msk [vmem:[#allocation12 + $0x10] ss:$8 sm:$0x3] %vm1419_vm0, %v375_v21  ;;  %v412_v29 = vadd.f32 %v410_v13, %v406_v23  ;;  %v457_v35 = vadd.f32 %v455_v45, %v451_v24  ;;  %v428_v0 = vmul.f32 %v426_v58, %v1467_v9  ;;  %v473_v48 = vmul.f32 %v472_v30, %v1316_v42  ;;  %s1558_s28 = sld [smem:[#allocation9 + $0x21]] }
  0x66   :  { %v433_v37 = vadd.f32 %v432_v4, %v429_v26  ;;  %v484_v50 = vstv %s1492_s16  ;;  %v479_v56 = vmul.f32 %v478_v59, %v1354_v10  ;;  %v446_v2 = vmul.f32 %v444_v7, %v1174_v57  ;;  %s1564_s29 = sld [smem:[#allocation9 + $0x22]] }
  0x67   :  { %v418_v1 = vadd.f32 %v416_v60, %v412_v29  ;;  %v463_v53 = vadd.f32 %v461_v28, %v457_v35  ;;  %v490_v20 = vstv %s1499_s17  ;;  %v450_v44 = vmul.f32 %v448_v62, %v1214_v33  ;;  %s1568_s30 = sld [smem:[#allocation9 + $0x23]] }
  0x68   :  { %v435_v15 = vmax.f32 %v433_v37, 0.0  ;;  %v456_v58 = vmul.f32 %v454_v14, %v1249_v55  ;;  %v485_v3 = vmul.f32 %v484_v50, %v1382_v40  ;;  %v462_v34 = vmul.f32 %v460_v16, %v1314_v22  ;;  %s1572_s6 = sld [smem:[#allocation9 + $0x24]] }
  0x69   :  { %v424_v36 = vadd.f32 %v422_v27, %v418_v1  ;;  %v469_v25 = vadd.f32 %v467_v38, %v463_v53  ;;  %v452_v32 = vadd.f32 %v450_v44, %v446_v2  ;;  %v468_v41 = vmul.f32 %v466_v49, %v1362_v17  ;;  %s1583_s3 = sld [smem:[#allocation9 + $0x25]] }
  0x6a   :  { %438 = vst.msk [vmem:[#allocation12 + $0x1] ss:$8 sm:$0x3] %vm1419_vm0, %v435_v15  ;;  %v474_v6 = vmul.f32 %v472_v30, %v1423_v63  ;;  %v502_v5 = vstv %s1505_s18  ;;  %v506_v60 = vstv %s1510_s19  ;;  %v512_v8 = vstv %s1513_s20  ;;  %s1587_s7 = sld [smem:[#allocation9 + $0x26]] }
  0x6b   :  { %v430_v43 = vadd.f32 %v428_v0, %v424_v36  ;;  %v475_v13 = vadd.f32 %v473_v48, %v469_v25  ;;  %v503_v46 = vmul.f32 %v502_v5, %v1160_v47  ;;  %v458_v7 = vadd.f32 %v456_v58, %v452_v32  ;;  %s1592_s8 = sld [smem:[#allocation9 + $0x27]] }
  0x6c   :  { %v507_v62 = vmul.f32 %v506_v60, %v1195_v19  ;;  %v518_v11 = vstv %s1518_s21  ;;  %v513_v12 = vmul.f32 %v512_v8, %v1223_v39  ;;  %v524_v21 = vstv %s1524_s22  ;;  %s1595_s9 = sld [smem:[#allocation11 + $0x4]] }
  0x6d   :  { %v434_v51 = vadd.f32 %v432_v4, %v430_v43  ;;  %v481_v54 = vadd.f32 %v479_v56, %v475_v13  ;;  %v519_v14 = vmul.f32 %v518_v11, %v1241_v52  ;;  %v464_v16 = vadd.f32 %v462_v34, %v458_v7  ;;  %s1604_s0 = sld [smem:[#allocation9 + $0x28]] }
  0x6e   :  { %v509_v49 = vadd.f32 %v507_v62, %v503_v46  ;;  %v530_v23 = vstv %s1531_s23  ;;  %v480_v4 = vmul.f32 %v478_v59, %v1456_v31  ;;  %v525_v26 = vmul.f32 %v524_v21, %v1277_v18  ;;  %s1610_s10 = sld [smem:[#allocation9 + $0x29]] }
  0x6f   :  { %v436_v24 = vmax.f32 %v434_v51, 0.0  ;;  %v487_v45 = vadd.f32 %v485_v3, %v481_v54  ;;  %v470_v27 = vadd.f32 %v468_v41, %v464_v16  ;;  %v536_v30 = vstv %s1535_s24  ;;  %s1615_s11 = sld [smem:[#allocation9 + $0x2a]] }
  0x70   :  { %v515_v28 = vadd.f32 %v513_v12, %v509_v49  ;;  %v542_v29 = vstv %s1540_s25  ;;  %v486_v38 = vmul.f32 %v484_v50, %v1467_v9  ;;  %v531_v37 = vmul.f32 %v530_v23, %v1316_v42  ;;  %s1620_s12 = sld [smem:[#allocation9 + $0x2b]] }
  0x71   :  { %441 = vst.msk [vmem:[#allocation12 + $0x11] ss:$8 sm:$0x3] %vm1419_vm0, %v436_v24  ;;  %v491_v35 = vadd.f32 %v490_v20, %v487_v45  ;;  %v537_v59 = vmul.f32 %v536_v30, %v1354_v10  ;;  %v476_v0 = vadd.f32 %v474_v6, %v470_v27  ;;  %v504_v1 = vmul.f32 %v502_v5, %v1174_v57  ;;  %s1623_s13 = sld [smem:[#allocation9 + $0x2c]] }
  0x72   :  { %v521_v48 = vadd.f32 %v519_v14, %v515_v28  ;;  %v508_v53 = vmul.f32 %v506_v60, %v1214_v33  ;;  %v543_v2 = vmul.f32 %v542_v29, %v1382_v40  ;;  %v548_v50 = vstv %s1549_s26  ;;  %s1634_s1 = sld [smem:[#allocation9 + $0x2d]] }
  0x73   :  { %v493_v56 = vmax.f32 %v491_v35, 0.0  ;;  %v514_v15 = vmul.f32 %v512_v8, %v1249_v55  ;;  %v482_v44 = vadd.f32 %v480_v4, %v476_v0  ;;  %v520_v25 = vmul.f32 %v518_v11, %v1314_v22  ;;  %s1639_s2 = sld [smem:[#allocation9 + $0x2e]] }
  0x74   :  { %v527_v58 = vadd.f32 %v525_v26, %v521_v48  ;;  %v510_v36 = vadd.f32 %v508_v53, %v504_v1  ;;  %v526_v3 = vmul.f32 %v524_v21, %v1362_v17  ;;  %v532_v34 = vmul.f32 %v530_v23, %v1423_v63  ;;  %s1643_s14 = sld [smem:[#allocation9 + $0x2f]] }
  0x75   :  { %496 = vst.msk [vmem:[#allocation12 + $0x2] ss:$8 sm:$0x3] %vm1419_vm0, %v493_v56  ;;  %v560_v32 = vstv %s1553_s27  ;;  %v564_v41 = vstv %s1558_s28  ;;  %v488_v6 = vadd.f32 %v486_v38, %v482_v44  ;;  %v570_v60 = vstv %s1564_s29  ;;  %s1652_s4 = sld [smem:[#allocation11 + $0x5]] }
  0x76   :  { %v533_v5 = vadd.f32 %v531_v37, %v527_v58  ;;  %v516_v43 = vadd.f32 %v514_v15, %v510_v36  ;;  %v561_v13 = vmul.f32 %v560_v32, %v1160_v47  ;;  %v565_v46 = vmul.f32 %v564_v41, %v1195_v19  ;;  %s1661_s15 = sld [smem:[#allocation9 + $0x30]] }
  0x77   :  { %v576_v7 = vstv %s1568_s30  ;;  %v582_v62 = vstv %s1572_s6  ;;  %v492_v8 = vadd.f32 %v490_v20, %v488_v6  ;;  %v571_v54 = vmul.f32 %v570_v60, %v1223_v39  ;;  %s1664_s16 = sld [smem:[#allocation9 + $0x31]] }
  0x78   :  { %v539_v11 = vadd.f32 %v537_v59, %v533_v5  ;;  %v522_v51 = vadd.f32 %v520_v25, %v516_v43  ;;  %v538_v12 = vmul.f32 %v536_v30, %v1456_v31  ;;  %v567_v14 = vadd.f32 %v565_v46, %v561_v13  ;;  %s1669_s17 = sld [smem:[#allocation9 + $0x32]] }
  0x79   :  { %v577_v16 = vmul.f32 %v576_v7, %v1241_v52  ;;  %v588_v49 = vstv %s1583_s3  ;;  %v494_v21 = vmax.f32 %v492_v8, 0.0  ;;  %v544_v24 = vmul.f32 %v542_v29, %v1467_v9  ;;  %s1672_s18 = sld [smem:[#allocation9 + $0x33]] }
  0x7a   :  { %v545_v20 = vadd.f32 %v543_v2, %v539_v11  ;;  %v528_v23 = vadd.f32 %v526_v3, %v522_v51  ;;  %v573_v45 = vadd.f32 %v571_v54, %v567_v14  ;;  %v583_v4 = vmul.f32 %v582_v62, %v1277_v18  ;;  %s1680_s19 = sld [smem:[#allocation9 + $0x34]] }
  0x7b   :  { %v594_v26 = vstv %s1587_s7  ;;  %v600_v27 = vstv %s1592_s8  ;;  %499 = vst.msk [vmem:[#allocation12 + $0x12] ss:$8 sm:$0x3] %vm1419_vm0, %v494_v21  ;;  %v589_v35 = vmul.f32 %v588_v49, %v1316_v42  ;;  %v606_v38 = vstv %s1595_s9  ;;  %s1685_s20 = sld [smem:[#allocation9 + $0x35]]  ;;  %s1044_s7 = smov [#allocation12]  }
  0x7c   :  { %v549_v28 = vadd.f32 %v548_v50, %v545_v20  ;;  %v534_v30 = vadd.f32 %v532_v34, %v528_v23  ;;  %v579_v37 = vadd.f32 %v577_v16, %v573_v45  ;;  %v562_v29 = vmul.f32 %v560_v32, %v1174_v57  ;;  %s1691_s21 = sld [smem:[#allocation9 + $0x36]]  ;;  %s795_s8 = sshll.u32 %s1044_s7, 4  ;;  %s796_s8 = int_to_ptr.vmem [resolvable:$true] %s795_s8 }
  0x7d   :  { %v566_v59 = vmul.f32 %v564_v41, %v1214_v33  ;;  %v572_v0 = vmul.f32 %v570_v60, %v1249_v55  ;;  %v595_v53 = vmul.f32 %v594_v26, %v1354_v10  ;;  %v601_v56 = vmul.f32 %v600_v27, %v1382_v40  ;;  %s1694_s22 = sld [smem:[#allocation9 + $0x37]] }
  0x7e   :  { %v551_v48 = vmax.f32 %v549_v28, 0.0  ;;  %v540_v1 = vadd.f32 %v538_v12, %v534_v30  ;;  %v585_v2 = vadd.f32 %v583_v4, %v579_v37  ;;  %v578_v44 = vmul.f32 %v576_v7, %v1314_v22  ;;  %s1703_s23 = sld [smem:[#allocation11 + $0x6]] }
  0x7f   :  { %v568_v15 = vadd.f32 %v566_v59, %v562_v29  ;;  %v584_v58 = vmul.f32 %v582_v62, %v1362_v17  ;;  %v590_v25 = vmul.f32 %v588_v49, %v1423_v63  ;;  %v618_v3 = vstv %s1604_s0  ;;  %s1708_s24 = sld [smem:[#allocation9 + $0x38]] }
  0x80   :  { %554 = vst.msk [vmem:[#allocation12 + $0x3] ss:$8 sm:$0x3] %vm1419_vm0, %v551_v48  ;;  %v546_v36 = vadd.f32 %v544_v24, %v540_v1  ;;  %v622_v34 = vstv %s1610_s10  ;;  %v591_v32 = vadd.f32 %v589_v35, %v585_v2  ;;  %v619_v6 = vmul.f32 %v618_v3, %v1160_v47  ;;  %s1714_s25 = sld [smem:[#allocation9 + $0x39]]  ;;  %s797_s10 = sshll.u32 %s1801_s5, 4  ;;  %s798_s10 = int_to_ptr.hbm [resolvable:$true] %s797_s10 }
  0x81   :  { %v574_v41 = vadd.f32 %v572_v0, %v568_v15  ;;  %v623_v5 = vmul.f32 %v622_v34, %v1195_v19  ;;  %v628_v13 = vstv %s1615_s11  ;;  %v634_v46 = vstv %s1620_s12  ;;  %s1718_s26 = sld [smem:[#allocation9 + $0x3a]]  ;;  %s1045_s11 = smov 256  }
  0x82   :  { %v550_v43 = vadd.f32 %v548_v50, %v546_v36  ;;  %v640_v60 = vstv %s1623_s13  ;;  %v597_v7 = vadd.f32 %v595_v53, %v591_v32  ;;  %v629_v11 = vmul.f32 %v628_v13, %v1223_v39  ;;  %s1722_s27 = sld [smem:[#allocation9 + $0x3b]]  ;;  %s1046_s12 = smov 16  }
  0x83   :  { %v580_v62 = vadd.f32 %v578_v44, %v574_v41  ;;  %v625_v8 = vadd.f32 %v623_v5, %v619_v6  ;;  %v596_v54 = vmul.f32 %v594_v26, %v1456_v31  ;;  %v635_v50 = vmul.f32 %v634_v46, %v1241_v52  ;;  %s1726_s28 = sld [smem:[#allocation9 + $0x3c]] }
  0x84   :  { %v552_v51 = vmax.f32 %v550_v43, 0.0  ;;  %v646_v12 = vstv %s1634_s1  ;;  %v603_v14 = vadd.f32 %v601_v56, %v597_v7  ;;  %v641_v21 = vmul.f32 %v640_v60, %v1277_v18  ;;  %s1735_s29 = sld [smem:[#allocation9 + $0x3d]] }
  0x85   :  { %v586_v16 = vadd.f32 %v584_v58, %v580_v62  ;;  %v631_v49 = vadd.f32 %v629_v11, %v625_v8  ;;  %v602_v20 = vmul.f32 %v600_v27, %v1467_v9  ;;  %v652_v23 = vstv %s1639_s2  ;;  %s1742_s30 = sld [smem:[#allocation9 + $0x3e]] }
  0x86   :  { %557 = vst.msk [vmem:[#allocation12 + $0x13] ss:$8 sm:$0x3] %vm1419_vm0, %v552_v51  ;;  %v658_v24 = vstv %s1643_s14  ;;  %v620_v45 = vmul.f32 %v618_v3, %v1174_v57  ;;  %v607_v4 = vadd.f32 %v606_v38, %v603_v14  ;;  %v647_v30 = vmul.f32 %v646_v12, %v1316_v42  ;;  %s1746_s6 = sld [smem:[#allocation9 + $0x3f]] }
  0x87   :  { %v592_v26 = vadd.f32 %v590_v25, %v586_v16  ;;  %v637_v28 = vadd.f32 %v635_v50, %v631_v49  ;;  %v653_v35 = vmul.f32 %v652_v23, %v1354_v10  ;;  %v664_v37 = vstv %s1652_s4  ;;  %s1772_s3 = sld [smem:[#allocation11 + $0x7]] }
  0x88   :  { %v624_v27 = vmul.f32 %v622_v34, %v1214_v33  ;;  %v630_v29 = vmul.f32 %v628_v13, %v1249_v55  ;;  %v609_v59 = vmax.f32 %v607_v4, 0.0  ;;  %v659_v1 = vmul.f32 %v658_v24, %v1382_v40 }
  0x89   :  { %v598_v0 = vadd.f32 %v596_v54, %v592_v26  ;;  %v643_v48 = vadd.f32 %v641_v21, %v637_v28  ;;  %v636_v56 = vmul.f32 %v634_v46, %v1314_v22  ;;  %v642_v2 = vmul.f32 %v640_v60, %v1362_v17 }
  0x8a   :  { %v626_v53 = vadd.f32 %v624_v27, %v620_v45  ;;  %v648_v15 = vmul.f32 %v646_v12, %v1423_v63  ;;  %612 = vst.msk [vmem:[#allocation12 + $0x4] ss:$8 sm:$0x3] %vm1419_vm0, %v609_v59  ;;  %v676_v36 = vstv %s1661_s15  ;;  %v680_v25 = vstv %s1664_s16 }
  0x8b   :  { %v604_v44 = vadd.f32 %v602_v20, %v598_v0  ;;  %v649_v58 = vadd.f32 %v647_v30, %v643_v48  ;;  %v677_v34 = vmul.f32 %v676_v36, %v1160_v47  ;;  %v681_v32 = vmul.f32 %v680_v25, %v1195_v19 }
  0x8c   :  { %v632_v3 = vadd.f32 %v630_v29, %v626_v53  ;;  %v686_v41 = vstv %s1669_s17  ;;  %v692_v13 = vstv %s1672_s18  ;;  %v698_v62 = vstv %s1680_s19 }
  0x8d   :  { %v608_v6 = vadd.f32 %v606_v38, %v604_v44  ;;  %v655_v5 = vadd.f32 %v653_v35, %v649_v58  ;;  %v687_v43 = vmul.f32 %v686_v41, %v1223_v39  ;;  %v683_v60 = vadd.f32 %v681_v32, %v677_v34 }
  0x8e   :  { %v638_v46 = vadd.f32 %v636_v56, %v632_v3  ;;  %v693_v7 = vmul.f32 %v692_v13, %v1241_v52  ;;  %v654_v38 = vmul.f32 %v652_v23, %v1456_v31  ;;  %v704_v51 = vstv %s1685_s20 }
  0x8f   :  { %v610_v8 = vmax.f32 %v608_v6, 0.0  ;;  %v661_v11 = vadd.f32 %v659_v1, %v655_v5  ;;  %v689_v50 = vadd.f32 %v687_v43, %v683_v60  ;;  %v699_v12 = vmul.f32 %v698_v62, %v1277_v18 }
  0x90   :  { %v644_v54 = vadd.f32 %v642_v2, %v638_v46  ;;  %v710_v14 = vstv %s1691_s21  ;;  %v660_v49 = vmul.f32 %v658_v24, %v1467_v9  ;;  %v705_v21 = vmul.f32 %v704_v51, %v1316_v42 }
  0x91   :  { %615 = vst.msk [vmem:[#allocation12 + $0x14] ss:$8 sm:$0x3] %vm1419_vm0, %v610_v8  ;;  %v665_v16 = vadd.f32 %v664_v37, %v661_v11  ;;  %v716_v20 = vstv %s1694_s22  ;;  %v695_v45 = vadd.f32 %v693_v7, %v689_v50  ;;  %v711_v4 = vmul.f32 %v710_v14, %v1354_v10 }
  0x92   :  { %v650_v23 = vadd.f32 %v648_v15, %v644_v54  ;;  %v678_v26 = vmul.f32 %v676_v36, %v1174_v57  ;;  %v722_v30 = vstv %s1703_s23  ;;  %v682_v35 = vmul.f32 %v680_v25, %v1214_v33 }
  0x93   :  { %v667_v28 = vmax.f32 %v665_v16, 0.0  ;;  %v688_v27 = vmul.f32 %v686_v41, %v1249_v55  ;;  %v701_v29 = vadd.f32 %v699_v12, %v695_v45  ;;  %v717_v59 = vmul.f32 %v716_v20, %v1382_v40 }
  0x94   :  { %v656_v24 = vadd.f32 %v654_v38, %v650_v23  ;;  %v694_v0 = vmul.f32 %v692_v13, %v1314_v22  ;;  %v684_v48 = vadd.f32 %v682_v35, %v678_v26  ;;  %v700_v1 = vmul.f32 %v698_v62, %v1362_v17 }
  0x95   :  { %670 = vst.msk [vmem:[#allocation12 + $0x5] ss:$8 sm:$0x3] %vm1419_vm0, %v667_v28  ;;  %v706_v53 = vmul.f32 %v704_v51, %v1423_v63  ;;  %v734_v56 = vstv %s1708_s24  ;;  %v707_v15 = vadd.f32 %v705_v21, %v701_v29  ;;  %v738_v58 = vstv %s1714_s25 }
  0x96   :  { %v662_v2 = vadd.f32 %v660_v49, %v656_v24  ;;  %v735_v44 = vmul.f32 %v734_v56, %v1160_v47  ;;  %v690_v36 = vadd.f32 %v688_v27, %v684_v48  ;;  %v739_v25 = vmul.f32 %v738_v58, %v1195_v19 }
  0x97   :  { %v744_v3 = vstv %s1718_s26  ;;  %v750_v34 = vstv %s1722_s27  ;;  %v713_v41 = vadd.f32 %v711_v4, %v707_v15  ;;  %v756_v46 = vstv %s1726_s28 }
  0x98   :  { %v666_v32 = vadd.f32 %v664_v37, %v662_v2  ;;  %v745_v6 = vmul.f32 %v744_v3, %v1223_v39  ;;  %v751_v5 = vmul.f32 %v750_v34, %v1241_v52  ;;  %v696_v43 = vadd.f32 %v694_v0, %v690_v36 }
  0x99   :  { %v741_v13 = vadd.f32 %v739_v25, %v735_v44  ;;  %v762_v60 = vstv %s1735_s29  ;;  %v719_v7 = vadd.f32 %v717_v59, %v713_v41  ;;  %v712_v62 = vmul.f32 %v710_v14, %v1456_v31 }
  0x9a   :  { %v668_v47 = vmax.f32 %v666_v32, 0.0  ;;  %v702_v19 = vadd.f32 %v700_v1, %v696_v43  ;;  %v757_v11 = vmul.f32 %v756_v46, %v1277_v18  ;;  %v768_v38 = vstv %s1742_s30 }
  0x9b   :  { %v747_v8 = vadd.f32 %v745_v6, %v741_v13  ;;  %v723_v39 = vadd.f32 %v722_v30, %v719_v7  ;;  %v718_v52 = vmul.f32 %v716_v20, %v1467_v9  ;;  %v763_v37 = vmul.f32 %v762_v60, %v1316_v42 }
  0x9c   :  { %673 = vst.msk [vmem:[#allocation12 + $0x15] ss:$8 sm:$0x3] %vm1419_vm0, %v668_v47  ;;  %v774_v51 = vstv %s1746_s6  ;;  %v708_v54 = vadd.f32 %v706_v53, %v702_v19  ;;  %v736_v12 = vmul.f32 %v734_v56, %v1174_v57  ;;  %v740_v14 = vmul.f32 %v738_v58, %v1214_v33 }
  0x9d   :  { %v753_v50 = vadd.f32 %v751_v5, %v747_v8  ;;  %v725_v16 = vmax.f32 %v723_v39, 0.0  ;;  %v769_v18 = vmul.f32 %v768_v38, %v1354_v10  ;;  %v746_v49 = vmul.f32 %v744_v3, %v1249_v55 }
  0x9e   :  { %v714_v21 = vadd.f32 %v712_v62, %v708_v54  ;;  %v742_v20 = vadd.f32 %v740_v14, %v736_v12  ;;  %v752_v42 = vmul.f32 %v750_v34, %v1314_v22  ;;  %v775_v45 = vmul.f32 %v774_v51, %v1382_v40 }
  0x9f   :  { %v759_v23 = vadd.f32 %v757_v11, %v753_v50  ;;  %728 = vst.msk [vmem:[#allocation12 + $0x6] ss:$8 sm:$0x3] %vm1419_vm0, %v725_v16  ;;  %v758_v33 = vmul.f32 %v756_v46, %v1362_v17  ;;  %v764_v55 = vmul.f32 %v762_v60, %v1423_v63  ;;  %v780_v27 = vstv %s1772_s3 }
  0xa0   :  { %v720_v4 = vadd.f32 %v718_v52, %v714_v21  ;;  %v748_v26 = vadd.f32 %v746_v49, %v742_v20  ;;  %v770_v22 = vmul.f32 %v768_v38, %v1456_v31  ;;  %v776_v48 = vmul.f32 %v774_v51, %v1467_v9 }
  0xa1   :  { %v765_v57 = vadd.f32 %v763_v37, %v759_v23 }
  0xa2   :  { %v724_v28 = vadd.f32 %v722_v30, %v720_v4  ;;  %v754_v35 = vadd.f32 %v752_v42, %v748_v26 }
  0xa3   :  { %v771_v10 = vadd.f32 %v769_v18, %v765_v57 }
  0xa4   :  { %v726_v24 = vmax.f32 %v724_v28, 0.0  ;;  %v760_v59 = vadd.f32 %v758_v33, %v754_v35 }
  0xa5   :  { %v777_v29 = vadd.f32 %v775_v45, %v771_v10 }
  0xa6   :  { %731 = vst.msk [vmem:[#allocation12 + $0x16] ss:$8 sm:$0x3] %vm1419_vm0, %v726_v24  ;;  %v766_v0 = vadd.f32 %v764_v55, %v760_v59 }
  0xa7   :  { %v781_v40 = vadd.f32 %v780_v27, %v777_v29 }
  0xa8   :  { %v772_v17 = vadd.f32 %v770_v22, %v766_v0 }
  0xa9   :  { %v783_v1 = vmax.f32 %v781_v40, 0.0 }
  0xaa   :  { %v778_v30 = vadd.f32 %v776_v48, %v772_v17 }
  0xab   :  { %786 = vst.msk [vmem:[#allocation12 + $0x7] ss:$8 sm:$0x3] %vm1419_vm0, %v783_v1 }
  0xac   :  { %v782_v63 = vadd.f32 %v780_v27, %v778_v30 }
  0xae   :  { %v784_v31 = vmax.f32 %v782_v63, 0.0 }
  0xb0   :  { %789 = vst.msk [vmem:[#allocation12 + $0x17] ss:$8 sm:$0x3] %vm1419_vm0, %v784_v31 }
  0xb1   :  { %803 = dma.vmem_to_hbm [thread:$0]  %s796_s8, 512, %s798_s10, [#allocation4], %s1045_s11, %s1045_s11, %s1046_s12  }
  0xb2   :  { %1035 = dma.done.wait [#allocation4], 512  }
  0xb3   :  { %1036 = vsyncadd [#allocation4], 4294966784 }
  0xb4   :  { %808 = vsyncpa [#allocation3], 1 }
  0xb5   :  { %809 = vsyncpa [#allocation4], 1 }
  0xb6   :  { %810 = vsyncpa [#allocation5], 1 }
  0xb7   :  { %811 = vsyncpa [#allocation6], 1 }
  0xb8   :  { %812 = vsyncpa [#allocation10], 1 }

</bundles_post_ra>
